<compile_context>
chip_gen: v5e
topology: v5e:2x2
jax: 0.10.0
libtpu: 0.0.40
codegen_flags: <defaults>
</compile_context>

<pallas_src>
import functools

import jax
import jax.numpy as jnp
from jax.experimental import pallas as pl
from jax.experimental.pallas import tpu as pltpu


# ----------------------------------------------------------------------------
# Helpers
# ----------------------------------------------------------------------------

def _pick_tile(m, target=1024):
    """Largest lane tile <= target that divides M (128-multiple when gridding)."""
    if m <= target:
        return m
    for t in range(target, 127, -1):
        if m % t == 0 and t % 128 == 0:
            return t
    return m  # fall back to a single block (comment: would need masked tail at scale)


# ----------------------------------------------------------------------------
# Pallas kernels (compute hot paths)
# ----------------------------------------------------------------------------

def _conv_kernel(x_ref, w_ref, s_ref, b_ref, o_ref, *, leaky):
    """(Cout,K) @ (K,tm) bf16 matmul, f32 accumulate, fused BN-affine + LeakyReLU."""
    y = jnp.dot(w_ref[...], x_ref[...], preferred_element_type=jnp.float32)
    y = y * s_ref[...] + b_ref[...]                      # (Cout,1) lane-broadcast
    if leaky:
        y = jnp.where(y > 0, y, 0.1 * y)
    o_ref[...] = y.astype(o_ref.dtype)


def _conv_residual_kernel(x_ref, w_ref, s_ref, b_ref, r_ref, o_ref, oadd_ref, *, leaky):
    """Conv epilogue-fused shortcut: emits both the plain conv output (still needed by
    later route layers) and conv+residual, in one pass."""
    y = jnp.dot(w_ref[...], x_ref[...], preferred_element_type=jnp.float32)
    y = y * s_ref[...] + b_ref[...]
    if leaky:
        y = jnp.where(y > 0, y, 0.1 * y)
    o_ref[...] = y.astype(o_ref.dtype)
    oadd_ref[...] = (y + r_ref[...].astype(jnp.float32)).astype(oadd_ref.dtype)


def _yolo_epilogue(y, mul, isx, isy, iswh, gx, gy):
    """Rows (channels) are (anchor, box-coord); columns are grid cells.
    xy rows: (sigmoid(y)+grid)*stride ; wh rows: exp(y)*anchor ; obj/cls: sigmoid."""
    shape = y.shape
    mul = jnp.broadcast_to(mul, shape)
    isx = jnp.broadcast_to(isx, shape)
    isy = jnp.broadcast_to(isy, shape)
    iswh = jnp.broadcast_to(iswh, shape)
    gx = jnp.broadcast_to(gx, shape)
    gy = jnp.broadcast_to(gy, shape)
    grid_add = isx * gx + isy * gy
    sig = 1.0 / (1.0 + jnp.exp(-y))
    box = (sig + grid_add) * mul          # xy -> (sig+grid)*stride ; obj/cls -> sig*1
    wh = jnp.exp(y) * mul                 # wh -> exp * anchor (pixels)
    return jnp.where(iswh > 0.5, wh, box)


def _conv_yolo_kernel(x_ref, w_ref, s_ref, b_ref,
                      mul_ref, isx_ref, isy_ref, iswh_ref, gx_ref, gy_ref, o_ref):
    """Detection-head conv (linear activation) fused with the YOLO transform."""
    y = jnp.dot(w_ref[...], x_ref[...], preferred_element_type=jnp.float32)
    y = y * s_ref[...] + b_ref[...]
    o_ref[...] = _yolo_epilogue(y, mul_ref[...], isx_ref[...], isy_ref[...],
                                iswh_ref[...], gx_ref[...], gy_ref[...])


def _yolo_only_kernel(x_ref, mul_ref, isx_ref, isy_ref, iswh_ref, gx_ref, gy_ref, o_ref):
    """Fallback when a yolo layer is not preceded by a conv (unused by this config)."""
    y = x_ref[...].astype(jnp.float32)
    o_ref[...] = _yolo_epilogue(y, mul_ref[...], isx_ref[...], isy_ref[...],
                                iswh_ref[...], gx_ref[...], gy_ref[...])


def _maxpool_kernel(t0_ref, t1_ref, t2_ref, t3_ref, o_ref):
    o_ref[...] = jnp.maximum(jnp.maximum(t0_ref[...], t1_ref[...]),
                             jnp.maximum(t2_ref[...], t3_ref[...]))


def _add_kernel(a_ref, b_ref, o_ref):
    o_ref[...] = a_ref[...] + b_ref[...]


# ----------------------------------------------------------------------------
# Pallas-call wrappers
# ----------------------------------------------------------------------------

_PAR = pltpu.CompilerParams(dimension_semantics=("parallel",))


def _conv_pallas(xcol, w, scale, bias, *, leaky, residual=None, yolo_aux=None):
    """xcol: (K, M) bf16, w: (Cout, K) bf16, scale/bias: (Cout, 1) f32."""
    K, M = xcol.shape
    Cout = w.shape[0]
    tm = _pick_tile(M)
    grid = (M // tm,)
    # NOTE: whole-K / whole-Cout resident blocks are fine at these sizes; at real YOLO
    # resolutions tile K/Cout as well and size for 64 MiB VMEM on v7x (vmem_limit_bytes).
    x_spec = pl.BlockSpec((K, tm), lambda i: (0, i))
    w_spec = pl.BlockSpec((Cout, K), lambda i: (0, 0))
    v_spec = pl.BlockSpec((Cout, 1), lambda i: (0, 0))
    o_spec = pl.BlockSpec((Cout, tm), lambda i: (0, i))

    flops = 2 * M * K * Cout
    bytes_io = 2 * (K * M + Cout * K) + 2 * Cout * M

    if yolo_aux is not None:
        mul_r, isx_r, isy_r, iswh_r, gx, gy = yolo_aux
        g_spec = pl.BlockSpec((1, tm), lambda i: (0, i))
        return pl.pallas_call(
            _conv_yolo_kernel,
            out_shape=jax.ShapeDtypeStruct((Cout, M), jnp.float32),
            grid=grid,
            in_specs=[x_spec, w_spec, v_spec, v_spec,
                      v_spec, v_spec, v_spec, v_spec, g_spec, g_spec],
            out_specs=o_spec,
            compiler_params=_PAR,
            cost_estimate=pl.CostEstimate(flops=flops, transcendentals=2 * Cout * M,
                                          bytes_accessed=bytes_io + 2 * Cout * M),
        )(xcol, w, scale, bias, mul_r, isx_r, isy_r, iswh_r, gx, gy)

    if residual is not None:
        kern = functools.partial(_conv_residual_kernel, leaky=leaky)
        return pl.pallas_call(
            kern,
            out_shape=(jax.ShapeDtypeStruct((Cout, M), jnp.bfloat16),
                       jax.ShapeDtypeStruct((Cout, M), jnp.bfloat16)),
            grid=grid,
            in_specs=[x_spec, w_spec, v_spec, v_spec,
                      pl.BlockSpec((Cout, tm), lambda i: (0, i))],
            out_specs=(o_spec, o_spec),
            compiler_params=_PAR,
            cost_estimate=pl.CostEstimate(flops=flops + Cout * M, transcendentals=0,
                                          bytes_accessed=bytes_io + 2 * 2 * Cout * M),
        )(xcol, w, scale, bias, residual)

    kern = functools.partial(_conv_kernel, leaky=leaky)
    return pl.pallas_call(
        kern,
        out_shape=jax.ShapeDtypeStruct((Cout, M), jnp.bfloat16),
        grid=grid,
        in_specs=[x_spec, w_spec, v_spec, v_spec],
        out_specs=o_spec,
        compiler_params=_PAR,
        cost_estimate=pl.CostEstimate(flops=flops, transcendentals=0,
                                      bytes_accessed=bytes_io),
    )(xcol, w, scale, bias)


def _maxpool2x2(x):
    """x: (C, N, H, W) bf16 -> (C, N, H/2, W/2)."""
    C, N, H, W = x.shape
    Ho, Wo = H // 2, W // 2
    M = N * Ho * Wo
    # TODO(synk): fold the 2x2 window max into the preceding conv kernel's epilogue (or
    # strided in-kernel reads) to avoid materializing the four taps in HBM.
    taps = [x[:, :, di::2, dj::2].reshape(C, M) for di in (0, 1) for dj in (0, 1)]
    tm = _pick_tile(M)
    spec = pl.BlockSpec((C, tm), lambda i: (0, i))
    out = pl.pallas_call(
        _maxpool_kernel,
        out_shape=jax.ShapeDtypeStruct((C, M), jnp.bfloat16),
        grid=(M // tm,),
        in_specs=[spec] * 4,
        out_specs=spec,
        compiler_params=_PAR,
    )(*taps)
    return out.reshape(C, N, Ho, Wo)


def _shortcut_add(a, b):
    """Fallback residual add (the config's shortcut is fused into the producing conv)."""
    C = a.shape[0]
    M = a.size // C
    tm = _pick_tile(M)
    spec = pl.BlockSpec((C, tm), lambda i: (0, i))
    out = pl.pallas_call(
        _add_kernel,
        out_shape=jax.ShapeDtypeStruct((C, M), jnp.bfloat16),
        grid=(M // tm,),
        in_specs=[spec, spec],
        out_specs=spec,
        input_output_aliases={1: 0},   # in-place into the 'from' layer buffer
        compiler_params=_PAR,
    )(a.reshape(C, M), b.reshape(C, M))
    return out.reshape(a.shape)


# ----------------------------------------------------------------------------
# Module implementations (JAX glue around the Pallas kernels)
# ----------------------------------------------------------------------------

def _im2col_cm(x, k, pad):
    """Channel-major im2col: (C, N, H, W) -> ((k*k*C), N*Ho*Wo)."""
    if pad:
        x = jnp.pad(x, ((0, 0), (0, 0), (pad, pad), (pad, pad)))
    C, N, Hp, Wp = x.shape
    Ho, Wo = Hp - (k - 1), Wp - (k - 1)
    if k == 1:
        return x.reshape(C, N * Ho * Wo), Ho, Wo
    # TODO(synk): at real resolutions accumulate the k*k taps inside the conv kernel
    # (grid over taps + f32 VMEM accumulator) instead of materializing k*k*C rows here.
    taps = [x[:, :, di:di + Ho, dj:dj + Wo] for di in range(k) for dj in range(k)]
    return jnp.concatenate(taps, axis=0).reshape(k * k * C, N * Ho * Wo), Ho, Wo


def _conv_module(x, p, residual=None):
    C, N, H, W = x.shape
    xcol, Ho, Wo = _im2col_cm(x, p['size'], p['pad'])
    if residual is None:
        y = _conv_pallas(xcol, p['w'], p['scale'], p['bias'], leaky=p['leaky'])
        return y.reshape(-1, N, Ho, Wo)
    r2 = residual.reshape(residual.shape[0], -1)
    y, yadd = _conv_pallas(xcol, p['w'], p['scale'], p['bias'],
                           leaky=p['leaky'], residual=r2)
    return y.reshape(-1, N, Ho, Wo), yadd.reshape(-1, N, Ho, Wo)


def _yolo_aux_arrays(anchors, no, stride, N, ny, nx):
    """Tiny per-row (C,1) and per-column (1,M) vectors the kernel composes in VMEM."""
    na = len(anchors)
    C = na * no
    mul, isx, isy, iswh = [], [], [], []
    for c in range(C):
        a, o = c // no, c % no
        mul.append(float(stride) if o < 2 else (float(anchors[a][o - 2]) if o < 4 else 1.0))
        isx.append(1.0 if o == 0 else 0.0)
        isy.append(1.0 if o == 1 else 0.0)
        iswh.append(1.0 if o in (2, 3) else 0.0)
    col = lambda v: jnp.asarray(v, jnp.float32).reshape(C, 1)
    M = N * ny * nx
    gx = jnp.broadcast_to(jnp.arange(nx, dtype=jnp.float32)[None, None, :],
                          (N, ny, nx)).reshape(1, M)
    gy = jnp.broadcast_to(jnp.arange(ny, dtype=jnp.float32)[None, :, None],
                          (N, ny, nx)).reshape(1, M)
    return (col(mul), col(isx), col(isy), col(iswh), gx, gy)


def _yolo_reshape(det, na, no, N, ny, nx):
    """(na*no, N*ny*nx) -> (N, na*ny*nx, no), matching torch view+permute+view."""
    det = det.reshape(na, no, N, ny, nx)
    return jnp.transpose(det, (2, 0, 3, 4, 1)).reshape(N, na * ny * nx, no)


def _conv_yolo_module(x, p, anchors, num_classes, img_size):
    """Fused detection-head conv + YOLO transform."""
    C, N, H, W = x.shape
    xcol, Ho, Wo = _im2col_cm(x, p['size'], p['pad'])
    na, no = len(anchors), num_classes + 5
    ny, nx = Ho, Wo
    stride = img_size // ny
    aux = _yolo_aux_arrays(anchors, no, stride, N, ny, nx)
    det = _conv_pallas(xcol, p['w'], p['scale'], p['bias'], leaky=False, yolo_aux=aux)
    return _yolo_reshape(det, na, no, N, ny, nx)


def _yolo_module(x, anchors, num_classes, img_size):
    """Standalone YOLO transform (only used if the previous layer is not a conv)."""
    C, N, ny, nx = x.shape
    na, no = len(anchors), num_classes + 5
    stride = img_size // ny
    M = N * ny * nx
    aux = _yolo_aux_arrays(anchors, no, stride, N, ny, nx)
    tm = _pick_tile(M)
    m_spec = pl.BlockSpec((C, tm), lambda i: (0, i))
    v_spec = pl.BlockSpec((C, 1), lambda i: (0, 0))
    g_spec = pl.BlockSpec((1, tm), lambda i: (0, i))
    det = pl.pallas_call(
        _yolo_only_kernel,
        out_shape=jax.ShapeDtypeStruct((C, M), jnp.float32),
        grid=(M // tm,),
        in_specs=[m_spec, v_spec, v_spec, v_spec, v_spec, g_spec, g_spec],
        out_specs=m_spec,
        compiler_params=_PAR,
    )(x.reshape(C, M), *aux)
    return _yolo_reshape(det, na, no, N, ny, nx)


# ----------------------------------------------------------------------------
# Synthetic Darknet config (conv/bn/leaky, maxpool, route(+groups), shortcut,
# upsample and two YOLO heads, like a tiny YOLOv3)
# ----------------------------------------------------------------------------

MODULE_DEFS = [
    {'type': 'convolutional', 'batch_normalize': 1, 'filters': 8,  'size': 3, 'stride': 1, 'pad': 1, 'activation': 'leaky'},   # 0
    {'type': 'maxpool', 'size': 2, 'stride': 2},                                                                               # 1
    {'type': 'convolutional', 'batch_normalize': 1, 'filters': 16, 'size': 3, 'stride': 1, 'pad': 1, 'activation': 'leaky'},   # 2
    {'type': 'route', 'layers': '-1', 'groups': 2, 'group_id': 1},                                                             # 3
    {'type': 'convolutional', 'batch_normalize': 1, 'filters': 16, 'size': 3, 'stride': 1, 'pad': 1, 'activation': 'leaky'},   # 4
    {'type': 'maxpool', 'size': 2, 'stride': 2},                                                                               # 5
    {'type': 'convolutional', 'batch_normalize': 1, 'filters': 32, 'size': 3, 'stride': 1, 'pad': 1, 'activation': 'leaky'},   # 6
    {'type': 'convolutional', 'batch_normalize': 1, 'filters': 16, 'size': 1, 'stride': 1, 'pad': 1, 'activation': 'leaky'},   # 7
    {'type': 'convolutional', 'batch_normalize': 1, 'filters': 32, 'size': 3, 'stride': 1, 'pad': 1, 'activation': 'leaky'},   # 8
    {'type': 'shortcut', 'from': -3, 'activation': 'linear'},                                                                  # 9
    {'type': 'convolutional', 'batch_normalize': 0, 'filters': 24, 'size': 1, 'stride': 1, 'pad': 1, 'activation': 'linear'},  # 10
    {'type': 'yolo', 'anchors': [(10., 14.), (23., 27.), (37., 58.)], 'classes': 3},                                           # 11
    {'type': 'route', 'layers': '-4'},                                                                                         # 12
    {'type': 'convolutional', 'batch_normalize': 1, 'filters': 16, 'size': 1, 'stride': 1, 'pad': 1, 'activation': 'leaky'},   # 13
    {'type': 'upsample', 'stride': 2},                                                                                         # 14
    {'type': 'route', 'layers': '-1,-13'},                                                                                     # 15
    {'type': 'convolutional', 'batch_normalize': 1, 'filters': 32, 'size': 3, 'stride': 1, 'pad': 1, 'activation': 'leaky'},   # 16
    {'type': 'convolutional', 'batch_normalize': 0, 'filters': 24, 'size': 1, 'stride': 1, 'pad': 1, 'activation': 'linear'},  # 17
    {'type': 'yolo', 'anchors': [(81., 82.), (135., 169.), (344., 319.)], 'classes': 3},                                       # 18
]


def init_darknet_params(module_defs, in_channels, key):
    """Deterministic synthetic params. BatchNorm folded into (scale, bias) (eval mode).
    Weights stored as (Cout, k*k*Cin) bf16 matching the channel-major im2col layout."""
    params = [None] * len(module_defs)
    out_ch = []
    prev = in_channels
    for i, md in enumerate(module_defs):
        t = md['type']
        if t == 'convolutional':
            k = int(md['size'])
            cout = int(md['filters'])
            cin = prev
            pad = (k - 1) // 2 if int(md['pad']) else 0
            key, kw, kb, kg, km, kv = jax.random.split(key, 6)
            w = jax.random.normal(kw, (k, k, cin, cout), jnp.float32) * 0.1
            if int(md['batch_normalize']):
                gamma = jax.random.uniform(kg, (cout,), jnp.float32, 0.8, 1.2)
                beta = jax.random.normal(kb, (cout,), jnp.float32) * 0.1
                rmean = jax.random.normal(km, (cout,), jnp.float32) * 0.1
                rvar = jax.random.uniform(kv, (cout,), jnp.float32, 0.5, 1.5)
                scale = gamma / jnp.sqrt(rvar + 1e-5)
                bias = beta - rmean * scale
            else:
                scale = jnp.ones((cout,), jnp.float32)
                bias = jax.random.normal(kb, (cout,), jnp.float32) * 0.1
            w2 = jnp.transpose(w, (3, 0, 1, 2)).reshape(cout, k * k * cin).astype(jnp.bfloat16)
            params[i] = dict(w=w2, scale=scale.reshape(cout, 1), bias=bias.reshape(cout, 1),
                             size=k, pad=pad, leaky=(md['activation'] == 'leaky'))
            prev = cout
        elif t == 'route':
            idxs = [int(l) for l in md['layers'].split(',')]
            csum = sum(out_ch[l if l >= 0 else i + l] for l in idxs)
            prev = csum // int(md.get('groups', 1))
        elif t == 'shortcut':
            prev = out_ch[i + int(md['from'])]
        # maxpool / upsample / yolo keep `prev`
        out_ch.append(prev)
    return params


def darknet_forward(x_nchw, module_defs, params):
    """Eval-mode forward: returns torch.cat(yolo_outputs, 1) equivalent (N, A, 5+classes)."""
    img_size = x_nchw.shape[2]
    # NCHW -> channel-major (C, N, H, W), bf16 activations throughout the backbone.
    x = jnp.transpose(x_nchw.astype(jnp.bfloat16), (1, 0, 2, 3))
    layer_outputs, yolo_outputs = [], []
    fused = {}  # layer index -> output produced by a fused kernel of the preceding conv
    for i, md in enumerate(module_defs):
        t = md['type']
        if i in fused:
            x = fused.pop(i)
            if t == 'yolo':
                yolo_outputs.append(x)
        elif t == 'convolutional':
            nxt = module_defs[i + 1] if i + 1 < len(module_defs) else None
            if nxt is not None and nxt['type'] == 'yolo':
                det = _conv_yolo_module(x, params[i], nxt['anchors'],
                                        int(nxt['classes']), img_size)
                fused[i + 1] = det
                x = None  # a pre-YOLO conv output is never routed in Darknet configs
            elif nxt is not None and nxt['type'] == 'shortcut':
                residual = layer_outputs[i + 1 + int(nxt['from'])]
                x, fused[i + 1] = _conv_module(x, params[i], residual=residual)
            else:
                x = _conv_module(x, params[i])
        elif t == 'maxpool':
            assert int(md['size']) == 2 and int(md['stride']) == 2
            x = _maxpool2x2(x)
        elif t == 'upsample':
            # TODO(synk): nearest-neighbour upsample is pure data replication (0 FLOPs); JAX glue.
            s = int(md['stride'])
            x = jnp.repeat(jnp.repeat(x, s, axis=2), s, axis=3)
        elif t == 'route':
            idxs = [int(l) for l in md['layers'].split(',')]
            combined = jnp.concatenate([layer_outputs[l] for l in idxs], axis=0)
            groups = int(md.get('groups', 1))
            gid = int(md.get('group_id', 0))
            gs = combined.shape[0] // groups
            x = combined[gs * gid:gs * (gid + 1)]
        elif t == 'shortcut':
            x = _shortcut_add(layer_outputs[-1], layer_outputs[int(md['from'])])
        elif t == 'yolo':
            x = _yolo_module(x, md['anchors'], int(md['classes']), img_size)
            yolo_outputs.append(x)
        layer_outputs.append(x)
    return jnp.concatenate(yolo_outputs, axis=1)


if __name__ == "__main__":
    key = jax.random.PRNGKey(0)
    key, pkey, xkey = jax.random.split(key, 3)
    params = init_darknet_params(MODULE_DEFS, in_channels=4, key=pkey)
    # PyTorch-style NCHW input: batch=2, channels=4, 16x16 image
    x = jax.random.normal(xkey, (2, 4, 16, 16), jnp.float32)

    fwd = jax.jit(lambda inp: darknet_forward(inp, MODULE_DEFS, params))
    out = jax.block_until_ready(fwd(x))
    assert out.shape == (2, 240, 8), out.shape
    print("KERNEL_OK")
</pallas_src>

<mosaic_0001>
module attributes {stable_mosaic.version = 11 : i64} {
  func.func @_conv_kernel(%arg0: i32, %arg1: memref<36x512xbf16, #tpu.memory_space<vmem>>, %arg2: memref<8x36xbf16, #tpu.memory_space<vmem>>, %arg3: memref<8x1xf32, #tpu.memory_space<vmem>>, %arg4: memref<8x1xf32, #tpu.memory_space<vmem>>, %arg5: memref<8x512xbf16, #tpu.memory_space<vmem>>) attributes {dimension_semantics = [#tpu.dimension_semantics<parallel>], iteration_bounds = array<i64: 1>, scalar_prefetch = 0 : i64, scratch_operands = 0 : i64, tpu.core_type = #tpu.core_type<tc>, window_params = [{transform_indices = @transform_0, window_bounds = array<i64: 36, 512>}, {pipeline_mode = #tpu.pipeline_mode<synchronous>, transform_indices = @transform_1, window_bounds = array<i64: 8, 36>}, {pipeline_mode = #tpu.pipeline_mode<synchronous>, transform_indices = @transform_2, window_bounds = array<i64: 8, 1>}, {pipeline_mode = #tpu.pipeline_mode<synchronous>, transform_indices = @transform_3, window_bounds = array<i64: 8, 1>}, {transform_indices = @transform_4, window_bounds = array<i64: 8, 512>}]} {
    %c0 = arith.constant 0 : index
    %c0_0 = arith.constant 0 : index
    %0 = vector.load %arg2[%c0, %c0_0] : memref<8x36xbf16, #tpu.memory_space<vmem>>, vector<8x36xbf16>
    %c0_1 = arith.constant 0 : index
    %c0_2 = arith.constant 0 : index
    %1 = vector.load %arg1[%c0_1, %c0_2] : memref<36x512xbf16, #tpu.memory_space<vmem>>, vector<36x512xbf16>
    %cst = arith.constant dense<0.000000e+00> : vector<8x512xf32>
    %2 = tpu.matmul %0, %1, %cst {dimension_numbers = #tpu.dot_dimension_numbers<[1], [0], [0], [1], [0, 0, 1, 1], [], []>} : vector<8x36xbf16>, vector<36x512xbf16>, vector<8x512xf32> -> vector<8x512xf32>
    %c0_3 = arith.constant 0 : index
    %c0_4 = arith.constant 0 : index
    %3 = vector.load %arg3[%c0_3, %c0_4] : memref<8x1xf32, #tpu.memory_space<vmem>>, vector<8x1xf32>
    %4 = vector.broadcast %3 : vector<8x1xf32> to vector<8x512xf32>
    %5 = arith.mulf %2, %4 : vector<8x512xf32>
    %c0_5 = arith.constant 0 : index
    %c0_6 = arith.constant 0 : index
    %6 = vector.load %arg4[%c0_5, %c0_6] : memref<8x1xf32, #tpu.memory_space<vmem>>, vector<8x1xf32>
    %7 = vector.broadcast %6 : vector<8x1xf32> to vector<8x512xf32>
    %8 = arith.addf %5, %7 : vector<8x512xf32>
    %cst_7 = arith.constant 0.000000e+00 : f32
    %9 = vector.broadcast %cst_7 : f32 to vector<8x512xf32>
    %10 = arith.cmpf ogt, %8, %9 : vector<8x512xf32>
    %cst_8 = arith.constant 1.000000e-01 : f32
    %11 = vector.broadcast %cst_8 : f32 to vector<8x512xf32>
    %12 = arith.mulf %11, %8 : vector<8x512xf32>
    %13 = arith.select %10, %8, %12 : vector<8x512xi1>, vector<8x512xf32>
    %14 = arith.truncf %13 : vector<8x512xf32> to vector<8x512xbf16>
    %c0_9 = arith.constant 0 : index
    %c0_10 = arith.constant 0 : index
    %15 = vector.load %arg5[%c0_9, %c0_10] : memref<8x512xbf16, #tpu.memory_space<vmem>>, vector<8x512xbf16>
    tpu.vector_store %arg5[%c0_9, %c0_10], %14 {strides = array<i32>} : memref<8x512xbf16, #tpu.memory_space<vmem>>, vector<8x512xbf16>,
    return
  }
  func.func @transform_0(%arg0: i32) -> (i32, i32) {
    %c0_i32 = arith.constant 0 : i32
    %c0_i32_0 = arith.constant 0 : i32
    return %c0_i32, %arg0 : i32, i32
  }
  func.func @transform_1(%arg0: i32) -> (i32, i32) {
    %c0_i32 = arith.constant 0 : i32
    %c0_i32_0 = arith.constant 0 : i32
    %c0_i32_1 = arith.constant 0 : i32
    return %c0_i32, %c0_i32_0 : i32, i32
  }
  func.func @transform_2(%arg0: i32) -> (i32, i32) {
    %c0_i32 = arith.constant 0 : i32
    %c0_i32_0 = arith.constant 0 : i32
    %c0_i32_1 = arith.constant 0 : i32
    return %c0_i32, %c0_i32_0 : i32, i32
  }
  func.func @transform_3(%arg0: i32) -> (i32, i32) {
    %c0_i32 = arith.constant 0 : i32
    %c0_i32_0 = arith.constant 0 : i32
    %c0_i32_1 = arith.constant 0 : i32
    return %c0_i32, %c0_i32_0 : i32, i32
  }
  func.func @transform_4(%arg0: i32) -> (i32, i32) {
    %c0_i32 = arith.constant 0 : i32
    %c0_i32_0 = arith.constant 0 : i32
    return %c0_i32, %arg0 : i32, i32
  }
}

module attributes {stable_mosaic.version = 11 : i64} {
  func.func @_maxpool_kernel(%arg0: i32, %arg1: memref<8x128xbf16, #tpu.memory_space<vmem>>, %arg2: memref<8x128xbf16, #tpu.memory_space<vmem>>, %arg3: memref<8x128xbf16, #tpu.memory_space<vmem>>, %arg4: memref<8x128xbf16, #tpu.memory_space<vmem>>, %arg5: memref<8x128xbf16, #tpu.memory_space<vmem>>) attributes {dimension_semantics = [#tpu.dimension_semantics<parallel>], iteration_bounds = array<i64: 1>, scalar_prefetch = 0 : i64, scratch_operands = 0 : i64, tpu.core_type = #tpu.core_type<tc>, window_params = [{transform_indices = @transform_0, window_bounds = array<i64: 8, 128>}, {transform_indices = @transform_1, window_bounds = array<i64: 8, 128>}, {transform_indices = @transform_2, window_bounds = array<i64: 8, 128>}, {transform_indices = @transform_3, window_bounds = array<i64: 8, 128>}, {transform_indices = @transform_4, window_bounds = array<i64: 8, 128>}]} {
    %c0 = arith.constant 0 : index
    %c0_0 = arith.constant 0 : index
    %0 = vector.load %arg1[%c0, %c0_0] : memref<8x128xbf16, #tpu.memory_space<vmem>>, vector<8x128xbf16>
    %c0_1 = arith.constant 0 : index
    %c0_2 = arith.constant 0 : index
    %1 = vector.load %arg2[%c0_1, %c0_2] : memref<8x128xbf16, #tpu.memory_space<vmem>>, vector<8x128xbf16>
    %2 = arith.maximumf %0, %1 : vector<8x128xbf16>
    %c0_3 = arith.constant 0 : index
    %c0_4 = arith.constant 0 : index
    %3 = vector.load %arg3[%c0_3, %c0_4] : memref<8x128xbf16, #tpu.memory_space<vmem>>, vector<8x128xbf16>
    %c0_5 = arith.constant 0 : index
    %c0_6 = arith.constant 0 : index
    %4 = vector.load %arg4[%c0_5, %c0_6] : memref<8x128xbf16, #tpu.memory_space<vmem>>, vector<8x128xbf16>
    %5 = arith.maximumf %3, %4 : vector<8x128xbf16>
    %6 = arith.maximumf %2, %5 : vector<8x128xbf16>
    %c0_7 = arith.constant 0 : index
    %c0_8 = arith.constant 0 : index
    %7 = vector.load %arg5[%c0_7, %c0_8] : memref<8x128xbf16, #tpu.memory_space<vmem>>, vector<8x128xbf16>
    tpu.vector_store %arg5[%c0_7, %c0_8], %6 {strides = array<i32>} : memref<8x128xbf16, #tpu.memory_space<vmem>>, vector<8x128xbf16>,
    return
  }
  func.func @transform_0(%arg0: i32) -> (i32, i32) {
    %c0_i32 = arith.constant 0 : i32
    %c0_i32_0 = arith.constant 0 : i32
    return %c0_i32, %arg0 : i32, i32
  }
  func.func @transform_1(%arg0: i32) -> (i32, i32) {
    %c0_i32 = arith.constant 0 : i32
    %c0_i32_0 = arith.constant 0 : i32
    return %c0_i32, %arg0 : i32, i32
  }
  func.func @transform_2(%arg0: i32) -> (i32, i32) {
    %c0_i32 = arith.constant 0 : i32
    %c0_i32_0 = arith.constant 0 : i32
    return %c0_i32, %arg0 : i32, i32
  }
  func.func @transform_3(%arg0: i32) -> (i32, i32) {
    %c0_i32 = arith.constant 0 : i32
    %c0_i32_0 = arith.constant 0 : i32
    return %c0_i32, %arg0 : i32, i32
  }
  func.func @transform_4(%arg0: i32) -> (i32, i32) {
    %c0_i32 = arith.constant 0 : i32
    %c0_i32_0 = arith.constant 0 : i32
    return %c0_i32, %arg0 : i32, i32
  }
}

module attributes {stable_mosaic.version = 11 : i64} {
  func.func @_conv_kernel(%arg0: i32, %arg1: memref<72x128xbf16, #tpu.memory_space<vmem>>, %arg2: memref<16x72xbf16, #tpu.memory_space<vmem>>, %arg3: memref<16x1xf32, #tpu.memory_space<vmem>>, %arg4: memref<16x1xf32, #tpu.memory_space<vmem>>, %arg5: memref<16x128xbf16, #tpu.memory_space<vmem>>) attributes {dimension_semantics = [#tpu.dimension_semantics<parallel>], iteration_bounds = array<i64: 1>, scalar_prefetch = 0 : i64, scratch_operands = 0 : i64, tpu.core_type = #tpu.core_type<tc>, window_params = [{transform_indices = @transform_0, window_bounds = array<i64: 72, 128>}, {pipeline_mode = #tpu.pipeline_mode<synchronous>, transform_indices = @transform_1, window_bounds = array<i64: 16, 72>}, {pipeline_mode = #tpu.pipeline_mode<synchronous>, transform_indices = @transform_2, window_bounds = array<i64: 16, 1>}, {pipeline_mode = #tpu.pipeline_mode<synchronous>, transform_indices = @transform_3, window_bounds = array<i64: 16, 1>}, {transform_indices = @transform_4, window_bounds = array<i64: 16, 128>}]} {
    %c0 = arith.constant 0 : index
    %c0_0 = arith.constant 0 : index
    %0 = vector.load %arg2[%c0, %c0_0] : memref<16x72xbf16, #tpu.memory_space<vmem>>, vector<16x72xbf16>
    %c0_1 = arith.constant 0 : index
    %c0_2 = arith.constant 0 : index
    %1 = vector.load %arg1[%c0_1, %c0_2] : memref<72x128xbf16, #tpu.memory_space<vmem>>, vector<72x128xbf16>
    %cst = arith.constant dense<0.000000e+00> : vector<16x128xf32>
    %2 = tpu.matmul %0, %1, %cst {dimension_numbers = #tpu.dot_dimension_numbers<[1], [0], [0], [1], [0, 0, 1, 1], [], []>} : vector<16x72xbf16>, vector<72x128xbf16>, vector<16x128xf32> -> vector<16x128xf32>
    %c0_3 = arith.constant 0 : index
    %c0_4 = arith.constant 0 : index
    %3 = vector.load %arg3[%c0_3, %c0_4] : memref<16x1xf32, #tpu.memory_space<vmem>>, vector<16x1xf32>
    %4 = vector.broadcast %3 : vector<16x1xf32> to vector<16x128xf32>
    %5 = arith.mulf %2, %4 : vector<16x128xf32>
    %c0_5 = arith.constant 0 : index
    %c0_6 = arith.constant 0 : index
    %6 = vector.load %arg4[%c0_5, %c0_6] : memref<16x1xf32, #tpu.memory_space<vmem>>, vector<16x1xf32>
    %7 = vector.broadcast %6 : vector<16x1xf32> to vector<16x128xf32>
    %8 = arith.addf %5, %7 : vector<16x128xf32>
    %cst_7 = arith.constant 0.000000e+00 : f32
    %9 = vector.broadcast %cst_7 : f32 to vector<16x128xf32>
    %10 = arith.cmpf ogt, %8, %9 : vector<16x128xf32>
    %cst_8 = arith.constant 1.000000e-01 : f32
    %11 = vector.broadcast %cst_8 : f32 to vector<16x128xf32>
    %12 = arith.mulf %11, %8 : vector<16x128xf32>
    %13 = arith.select %10, %8, %12 : vector<16x128xi1>, vector<16x128xf32>
    %14 = arith.truncf %13 : vector<16x128xf32> to vector<16x128xbf16>
    %c0_9 = arith.constant 0 : index
    %c0_10 = arith.constant 0 : index
    %15 = vector.load %arg5[%c0_9, %c0_10] : memref<16x128xbf16, #tpu.memory_space<vmem>>, vector<16x128xbf16>
    tpu.vector_store %arg5[%c0_9, %c0_10], %14 {strides = array<i32>} : memref<16x128xbf16, #tpu.memory_space<vmem>>, vector<16x128xbf16>,
    return
  }
  func.func @transform_0(%arg0: i32) -> (i32, i32) {
    %c0_i32 = arith.constant 0 : i32
    %c0_i32_0 = arith.constant 0 : i32
    return %c0_i32, %arg0 : i32, i32
  }
  func.func @transform_1(%arg0: i32) -> (i32, i32) {
    %c0_i32 = arith.constant 0 : i32
    %c0_i32_0 = arith.constant 0 : i32
    %c0_i32_1 = arith.constant 0 : i32
    return %c0_i32, %c0_i32_0 : i32, i32
  }
  func.func @transform_2(%arg0: i32) -> (i32, i32) {
    %c0_i32 = arith.constant 0 : i32
    %c0_i32_0 = arith.constant 0 : i32
    %c0_i32_1 = arith.constant 0 : i32
    return %c0_i32, %c0_i32_0 : i32, i32
  }
  func.func @transform_3(%arg0: i32) -> (i32, i32) {
    %c0_i32 = arith.constant 0 : i32
    %c0_i32_0 = arith.constant 0 : i32
    %c0_i32_1 = arith.constant 0 : i32
    return %c0_i32, %c0_i32_0 : i32, i32
  }
  func.func @transform_4(%arg0: i32) -> (i32, i32) {
    %c0_i32 = arith.constant 0 : i32
    %c0_i32_0 = arith.constant 0 : i32
    return %c0_i32, %arg0 : i32, i32
  }
}

module attributes {stable_mosaic.version = 11 : i64} {
  func.func @_maxpool_kernel(%arg0: i32, %arg1: memref<16x32xbf16, #tpu.memory_space<vmem>>, %arg2: memref<16x32xbf16, #tpu.memory_space<vmem>>, %arg3: memref<16x32xbf16, #tpu.memory_space<vmem>>, %arg4: memref<16x32xbf16, #tpu.memory_space<vmem>>, %arg5: memref<16x32xbf16, #tpu.memory_space<vmem>>) attributes {dimension_semantics = [#tpu.dimension_semantics<parallel>], iteration_bounds = array<i64: 1>, scalar_prefetch = 0 : i64, scratch_operands = 0 : i64, tpu.core_type = #tpu.core_type<tc>, window_params = [{transform_indices = @transform_0, window_bounds = array<i64: 16, 32>}, {transform_indices = @transform_1, window_bounds = array<i64: 16, 32>}, {transform_indices = @transform_2, window_bounds = array<i64: 16, 32>}, {transform_indices = @transform_3, window_bounds = array<i64: 16, 32>}, {transform_indices = @transform_4, window_bounds = array<i64: 16, 32>}]} {
    %c0 = arith.constant 0 : index
    %c0_0 = arith.constant 0 : index
    %0 = vector.load %arg1[%c0, %c0_0] : memref<16x32xbf16, #tpu.memory_space<vmem>>, vector<16x32xbf16>
    %c0_1 = arith.constant 0 : index
    %c0_2 = arith.constant 0 : index
    %1 = vector.load %arg2[%c0_1, %c0_2] : memref<16x32xbf16, #tpu.memory_space<vmem>>, vector<16x32xbf16>
    %2 = arith.maximumf %0, %1 : vector<16x32xbf16>
    %c0_3 = arith.constant 0 : index
    %c0_4 = arith.constant 0 : index
    %3 = vector.load %arg3[%c0_3, %c0_4] : memref<16x32xbf16, #tpu.memory_space<vmem>>, vector<16x32xbf16>
    %c0_5 = arith.constant 0 : index
    %c0_6 = arith.constant 0 : index
    %4 = vector.load %arg4[%c0_5, %c0_6] : memref<16x32xbf16, #tpu.memory_space<vmem>>, vector<16x32xbf16>
    %5 = arith.maximumf %3, %4 : vector<16x32xbf16>
    %6 = arith.maximumf %2, %5 : vector<16x32xbf16>
    %c0_7 = arith.constant 0 : index
    %c0_8 = arith.constant 0 : index
    %7 = vector.load %arg5[%c0_7, %c0_8] : memref<16x32xbf16, #tpu.memory_space<vmem>>, vector<16x32xbf16>
    tpu.vector_store %arg5[%c0_7, %c0_8], %6 {strides = array<i32>} : memref<16x32xbf16, #tpu.memory_space<vmem>>, vector<16x32xbf16>,
    return
  }
  func.func @transform_0(%arg0: i32) -> (i32, i32) {
    %c0_i32 = arith.constant 0 : i32
    %c0_i32_0 = arith.constant 0 : i32
    return %c0_i32, %arg0 : i32, i32
  }
  func.func @transform_1(%arg0: i32) -> (i32, i32) {
    %c0_i32 = arith.constant 0 : i32
    %c0_i32_0 = arith.constant 0 : i32
    return %c0_i32, %arg0 : i32, i32
  }
  func.func @transform_2(%arg0: i32) -> (i32, i32) {
    %c0_i32 = arith.constant 0 : i32
    %c0_i32_0 = arith.constant 0 : i32
    return %c0_i32, %arg0 : i32, i32
  }
  func.func @transform_3(%arg0: i32) -> (i32, i32) {
    %c0_i32 = arith.constant 0 : i32
    %c0_i32_0 = arith.constant 0 : i32
    return %c0_i32, %arg0 : i32, i32
  }
  func.func @transform_4(%arg0: i32) -> (i32, i32) {
    %c0_i32 = arith.constant 0 : i32
    %c0_i32_0 = arith.constant 0 : i32
    return %c0_i32, %arg0 : i32, i32
  }
}

module attributes {stable_mosaic.version = 11 : i64} {
  func.func @_conv_kernel(%arg0: i32, %arg1: memref<144x32xbf16, #tpu.memory_space<vmem>>, %arg2: memref<32x144xbf16, #tpu.memory_space<vmem>>, %arg3: memref<32x1xf32, #tpu.memory_space<vmem>>, %arg4: memref<32x1xf32, #tpu.memory_space<vmem>>, %arg5: memref<32x32xbf16, #tpu.memory_space<vmem>>) attributes {dimension_semantics = [#tpu.dimension_semantics<parallel>], iteration_bounds = array<i64: 1>, scalar_prefetch = 0 : i64, scratch_operands = 0 : i64, tpu.core_type = #tpu.core_type<tc>, window_params = [{transform_indices = @transform_0, window_bounds = array<i64: 144, 32>}, {pipeline_mode = #tpu.pipeline_mode<synchronous>, transform_indices = @transform_1, window_bounds = array<i64: 32, 144>}, {pipeline_mode = #tpu.pipeline_mode<synchronous>, transform_indices = @transform_2, window_bounds = array<i64: 32, 1>}, {pipeline_mode = #tpu.pipeline_mode<synchronous>, transform_indices = @transform_3, window_bounds = array<i64: 32, 1>}, {transform_indices = @transform_4, window_bounds = array<i64: 32, 32>}]} {
    %c0 = arith.constant 0 : index
    %c0_0 = arith.constant 0 : index
    %0 = vector.load %arg2[%c0, %c0_0] : memref<32x144xbf16, #tpu.memory_space<vmem>>, vector<32x144xbf16>
    %c0_1 = arith.constant 0 : index
    %c0_2 = arith.constant 0 : index
    %1 = vector.load %arg1[%c0_1, %c0_2] : memref<144x32xbf16, #tpu.memory_space<vmem>>, vector<144x32xbf16>
    %cst = arith.constant dense<0.000000e+00> : vector<32x32xf32>
    %2 = tpu.matmul %0, %1, %cst {dimension_numbers = #tpu.dot_dimension_numbers<[1], [0], [0], [1], [0, 0, 1, 1], [], []>} : vector<32x144xbf16>, vector<144x32xbf16>, vector<32x32xf32> -> vector<32x32xf32>
    %c0_3 = arith.constant 0 : index
    %c0_4 = arith.constant 0 : index
    %3 = vector.load %arg3[%c0_3, %c0_4] : memref<32x1xf32, #tpu.memory_space<vmem>>, vector<32x1xf32>
    %4 = vector.broadcast %3 : vector<32x1xf32> to vector<32x32xf32>
    %5 = arith.mulf %2, %4 : vector<32x32xf32>
    %c0_5 = arith.constant 0 : index
    %c0_6 = arith.constant 0 : index
    %6 = vector.load %arg4[%c0_5, %c0_6] : memref<32x1xf32, #tpu.memory_space<vmem>>, vector<32x1xf32>
    %7 = vector.broadcast %6 : vector<32x1xf32> to vector<32x32xf32>
    %8 = arith.addf %5, %7 : vector<32x32xf32>
    %cst_7 = arith.constant 0.000000e+00 : f32
    %9 = vector.broadcast %cst_7 : f32 to vector<32x32xf32>
    %10 = arith.cmpf ogt, %8, %9 : vector<32x32xf32>
    %cst_8 = arith.constant 1.000000e-01 : f32
    %11 = vector.broadcast %cst_8 : f32 to vector<32x32xf32>
    %12 = arith.mulf %11, %8 : vector<32x32xf32>
    %13 = arith.select %10, %8, %12 : vector<32x32xi1>, vector<32x32xf32>
    %14 = arith.truncf %13 : vector<32x32xf32> to vector<32x32xbf16>
    %c0_9 = arith.constant 0 : index
    %c0_10 = arith.constant 0 : index
    %15 = vector.load %arg5[%c0_9, %c0_10] : memref<32x32xbf16, #tpu.memory_space<vmem>>, vector<32x32xbf16>
    tpu.vector_store %arg5[%c0_9, %c0_10], %14 {strides = array<i32>} : memref<32x32xbf16, #tpu.memory_space<vmem>>, vector<32x32xbf16>,
    return
  }
  func.func @transform_0(%arg0: i32) -> (i32, i32) {
    %c0_i32 = arith.constant 0 : i32
    %c0_i32_0 = arith.constant 0 : i32
    return %c0_i32, %arg0 : i32, i32
  }
  func.func @transform_1(%arg0: i32) -> (i32, i32) {
    %c0_i32 = arith.constant 0 : i32
    %c0_i32_0 = arith.constant 0 : i32
    %c0_i32_1 = arith.constant 0 : i32
    return %c0_i32, %c0_i32_0 : i32, i32
  }
  func.func @transform_2(%arg0: i32) -> (i32, i32) {
    %c0_i32 = arith.constant 0 : i32
    %c0_i32_0 = arith.constant 0 : i32
    %c0_i32_1 = arith.constant 0 : i32
    return %c0_i32, %c0_i32_0 : i32, i32
  }
  func.func @transform_3(%arg0: i32) -> (i32, i32) {
    %c0_i32 = arith.constant 0 : i32
    %c0_i32_0 = arith.constant 0 : i32
    %c0_i32_1 = arith.constant 0 : i32
    return %c0_i32, %c0_i32_0 : i32, i32
  }
  func.func @transform_4(%arg0: i32) -> (i32, i32) {
    %c0_i32 = arith.constant 0 : i32
    %c0_i32_0 = arith.constant 0 : i32
    return %c0_i32, %arg0 : i32, i32
  }
}

module attributes {stable_mosaic.version = 11 : i64} {
  func.func @_conv_kernel(%arg0: i32, %arg1: memref<32x32xbf16, #tpu.memory_space<vmem>>, %arg2: memref<16x32xbf16, #tpu.memory_space<vmem>>, %arg3: memref<16x1xf32, #tpu.memory_space<vmem>>, %arg4: memref<16x1xf32, #tpu.memory_space<vmem>>, %arg5: memref<16x32xbf16, #tpu.memory_space<vmem>>) attributes {dimension_semantics = [#tpu.dimension_semantics<parallel>], iteration_bounds = array<i64: 1>, scalar_prefetch = 0 : i64, scratch_operands = 0 : i64, tpu.core_type = #tpu.core_type<tc>, window_params = [{transform_indices = @transform_0, window_bounds = array<i64: 32, 32>}, {pipeline_mode = #tpu.pipeline_mode<synchronous>, transform_indices = @transform_1, window_bounds = array<i64: 16, 32>}, {pipeline_mode = #tpu.pipeline_mode<synchronous>, transform_indices = @transform_2, window_bounds = array<i64: 16, 1>}, {pipeline_mode = #tpu.pipeline_mode<synchronous>, transform_indices = @transform_3, window_bounds = array<i64: 16, 1>}, {transform_indices = @transform_4, window_bounds = array<i64: 16, 32>}]} {
    %c0 = arith.constant 0 : index
    %c0_0 = arith.constant 0 : index
    %0 = vector.load %arg2[%c0, %c0_0] : memref<16x32xbf16, #tpu.memory_space<vmem>>, vector<16x32xbf16>
    %c0_1 = arith.constant 0 : index
    %c0_2 = arith.constant 0 : index
    %1 = vector.load %arg1[%c0_1, %c0_2] : memref<32x32xbf16, #tpu.memory_space<vmem>>, vector<32x32xbf16>
    %cst = arith.constant dense<0.000000e+00> : vector<16x32xf32>
    %2 = tpu.matmul %0, %1, %cst {dimension_numbers = #tpu.dot_dimension_numbers<[1], [0], [0], [1], [0, 0, 1, 1], [], []>} : vector<16x32xbf16>, vector<32x32xbf16>, vector<16x32xf32> -> vector<16x32xf32>
    %c0_3 = arith.constant 0 : index
    %c0_4 = arith.constant 0 : index
    %3 = vector.load %arg3[%c0_3, %c0_4] : memref<16x1xf32, #tpu.memory_space<vmem>>, vector<16x1xf32>
    %4 = vector.broadcast %3 : vector<16x1xf32> to vector<16x32xf32>
    %5 = arith.mulf %2, %4 : vector<16x32xf32>
    %c0_5 = arith.constant 0 : index
    %c0_6 = arith.constant 0 : index
    %6 = vector.load %arg4[%c0_5, %c0_6] : memref<16x1xf32, #tpu.memory_space<vmem>>, vector<16x1xf32>
    %7 = vector.broadcast %6 : vector<16x1xf32> to vector<16x32xf32>
    %8 = arith.addf %5, %7 : vector<16x32xf32>
    %cst_7 = arith.constant 0.000000e+00 : f32
    %9 = vector.broadcast %cst_7 : f32 to vector<16x32xf32>
    %10 = arith.cmpf ogt, %8, %9 : vector<16x32xf32>
    %cst_8 = arith.constant 1.000000e-01 : f32
    %11 = vector.broadcast %cst_8 : f32 to vector<16x32xf32>
    %12 = arith.mulf %11, %8 : vector<16x32xf32>
    %13 = arith.select %10, %8, %12 : vector<16x32xi1>, vector<16x32xf32>
    %14 = arith.truncf %13 : vector<16x32xf32> to vector<16x32xbf16>
    %c0_9 = arith.constant 0 : index
    %c0_10 = arith.constant 0 : index
    %15 = vector.load %arg5[%c0_9, %c0_10] : memref<16x32xbf16, #tpu.memory_space<vmem>>, vector<16x32xbf16>
    tpu.vector_store %arg5[%c0_9, %c0_10], %14 {strides = array<i32>} : memref<16x32xbf16, #tpu.memory_space<vmem>>, vector<16x32xbf16>,
    return
  }
  func.func @transform_0(%arg0: i32) -> (i32, i32) {
    %c0_i32 = arith.constant 0 : i32
    %c0_i32_0 = arith.constant 0 : i32
    return %c0_i32, %arg0 : i32, i32
  }
  func.func @transform_1(%arg0: i32) -> (i32, i32) {
    %c0_i32 = arith.constant 0 : i32
    %c0_i32_0 = arith.constant 0 : i32
    %c0_i32_1 = arith.constant 0 : i32
    return %c0_i32, %c0_i32_0 : i32, i32
  }
  func.func @transform_2(%arg0: i32) -> (i32, i32) {
    %c0_i32 = arith.constant 0 : i32
    %c0_i32_0 = arith.constant 0 : i32
    %c0_i32_1 = arith.constant 0 : i32
    return %c0_i32, %c0_i32_0 : i32, i32
  }
  func.func @transform_3(%arg0: i32) -> (i32, i32) {
    %c0_i32 = arith.constant 0 : i32
    %c0_i32_0 = arith.constant 0 : i32
    %c0_i32_1 = arith.constant 0 : i32
    return %c0_i32, %c0_i32_0 : i32, i32
  }
  func.func @transform_4(%arg0: i32) -> (i32, i32) {
    %c0_i32 = arith.constant 0 : i32
    %c0_i32_0 = arith.constant 0 : i32
    return %c0_i32, %arg0 : i32, i32
  }
}

module attributes {stable_mosaic.version = 11 : i64} {
  func.func @_conv_residual_kernel(%arg0: i32, %arg1: memref<144x32xbf16, #tpu.memory_space<vmem>>, %arg2: memref<32x144xbf16, #tpu.memory_space<vmem>>, %arg3: memref<32x1xf32, #tpu.memory_space<vmem>>, %arg4: memref<32x1xf32, #tpu.memory_space<vmem>>, %arg5: memref<32x32xbf16, #tpu.memory_space<vmem>>, %arg6: memref<32x32xbf16, #tpu.memory_space<vmem>>, %arg7: memref<32x32xbf16, #tpu.memory_space<vmem>>) attributes {dimension_semantics = [#tpu.dimension_semantics<parallel>], iteration_bounds = array<i64: 1>, scalar_prefetch = 0 : i64, scratch_operands = 0 : i64, tpu.core_type = #tpu.core_type<tc>, window_params = [{transform_indices = @transform_0, window_bounds = array<i64: 144, 32>}, {pipeline_mode = #tpu.pipeline_mode<synchronous>, transform_indices = @transform_1, window_bounds = array<i64: 32, 144>}, {pipeline_mode = #tpu.pipeline_mode<synchronous>, transform_indices = @transform_2, window_bounds = array<i64: 32, 1>}, {pipeline_mode = #tpu.pipeline_mode<synchronous>, transform_indices = @transform_3, window_bounds = array<i64: 32, 1>}, {transform_indices = @transform_4, window_bounds = array<i64: 32, 32>}, {transform_indices = @transform_5, window_bounds = array<i64: 32, 32>}, {transform_indices = @transform_6, window_bounds = array<i64: 32, 32>}]} {
    %c0 = arith.constant 0 : index
    %c0_0 = arith.constant 0 : index
    %0 = vector.load %arg2[%c0, %c0_0] : memref<32x144xbf16, #tpu.memory_space<vmem>>, vector<32x144xbf16>
    %c0_1 = arith.constant 0 : index
    %c0_2 = arith.constant 0 : index
    %1 = vector.load %arg1[%c0_1, %c0_2] : memref<144x32xbf16, #tpu.memory_space<vmem>>, vector<144x32xbf16>
    %cst = arith.constant dense<0.000000e+00> : vector<32x32xf32>
    %2 = tpu.matmul %0, %1, %cst {dimension_numbers = #tpu.dot_dimension_numbers<[1], [0], [0], [1], [0, 0, 1, 1], [], []>} : vector<32x144xbf16>, vector<144x32xbf16>, vector<32x32xf32> -> vector<32x32xf32>
    %c0_3 = arith.constant 0 : index
    %c0_4 = arith.constant 0 : index
    %3 = vector.load %arg3[%c0_3, %c0_4] : memref<32x1xf32, #tpu.memory_space<vmem>>, vector<32x1xf32>
    %4 = vector.broadcast %3 : vector<32x1xf32> to vector<32x32xf32>
    %5 = arith.mulf %2, %4 : vector<32x32xf32>
    %c0_5 = arith.constant 0 : index
    %c0_6 = arith.constant 0 : index
    %6 = vector.load %arg4[%c0_5, %c0_6] : memref<32x1xf32, #tpu.memory_space<vmem>>, vector<32x1xf32>
    %7 = vector.broadcast %6 : vector<32x1xf32> to vector<32x32xf32>
    %8 = arith.addf %5, %7 : vector<32x32xf32>
    %cst_7 = arith.constant 0.000000e+00 : f32
    %9 = vector.broadcast %cst_7 : f32 to vector<32x32xf32>
    %10 = arith.cmpf ogt, %8, %9 : vector<32x32xf32>
    %cst_8 = arith.constant 1.000000e-01 : f32
    %11 = vector.broadcast %cst_8 : f32 to vector<32x32xf32>
    %12 = arith.mulf %11, %8 : vector<32x32xf32>
    %13 = arith.select %10, %8, %12 : vector<32x32xi1>, vector<32x32xf32>
    %14 = arith.truncf %13 : vector<32x32xf32> to vector<32x32xbf16>
    %c0_9 = arith.constant 0 : index
    %c0_10 = arith.constant 0 : index
    %15 = vector.load %arg6[%c0_9, %c0_10] : memref<32x32xbf16, #tpu.memory_space<vmem>>, vector<32x32xbf16>
    tpu.vector_store %arg6[%c0_9, %c0_10], %14 {strides = array<i32>} : memref<32x32xbf16, #tpu.memory_space<vmem>>, vector<32x32xbf16>,
    %c0_11 = arith.constant 0 : index
    %c0_12 = arith.constant 0 : index
    %16 = vector.load %arg5[%c0_11, %c0_12] : memref<32x32xbf16, #tpu.memory_space<vmem>>, vector<32x32xbf16>
    %17 = arith.extf %16 : vector<32x32xbf16> to vector<32x32xf32>
    %18 = arith.addf %13, %17 : vector<32x32xf32>
    %19 = arith.truncf %18 : vector<32x32xf32> to vector<32x32xbf16>
    %c0_13 = arith.constant 0 : index
    %c0_14 = arith.constant 0 : index
    %20 = vector.load %arg7[%c0_13, %c0_14] : memref<32x32xbf16, #tpu.memory_space<vmem>>, vector<32x32xbf16>
    tpu.vector_store %arg7[%c0_13, %c0_14], %19 {strides = array<i32>} : memref<32x32xbf16, #tpu.memory_space<vmem>>, vector<32x32xbf16>,
    return
  }
  func.func @transform_0(%arg0: i32) -> (i32, i32) {
    %c0_i32 = arith.constant 0 : i32
    %c0_i32_0 = arith.constant 0 : i32
    return %c0_i32, %arg0 : i32, i32
  }
  func.func @transform_1(%arg0: i32) -> (i32, i32) {
    %c0_i32 = arith.constant 0 : i32
    %c0_i32_0 = arith.constant 0 : i32
    %c0_i32_1 = arith.constant 0 : i32
    return %c0_i32, %c0_i32_0 : i32, i32
  }
  func.func @transform_2(%arg0: i32) -> (i32, i32) {
    %c0_i32 = arith.constant 0 : i32
    %c0_i32_0 = arith.constant 0 : i32
    %c0_i32_1 = arith.constant 0 : i32
    return %c0_i32, %c0_i32_0 : i32, i32
  }
  func.func @transform_3(%arg0: i32) -> (i32, i32) {
    %c0_i32 = arith.constant 0 : i32
    %c0_i32_0 = arith.constant 0 : i32
    %c0_i32_1 = arith.constant 0 : i32
    return %c0_i32, %c0_i32_0 : i32, i32
  }
  func.func @transform_4(%arg0: i32) -> (i32, i32) {
    %c0_i32 = arith.constant 0 : i32
    %c0_i32_0 = arith.constant 0 : i32
    return %c0_i32, %arg0 : i32, i32
  }
  func.func @transform_5(%arg0: i32) -> (i32, i32) {
    %c0_i32 = arith.constant 0 : i32
    %c0_i32_0 = arith.constant 0 : i32
    return %c0_i32, %arg0 : i32, i32
  }
  func.func @transform_6(%arg0: i32) -> (i32, i32) {
    %c0_i32 = arith.constant 0 : i32
    %c0_i32_0 = arith.constant 0 : i32
    return %c0_i32, %arg0 : i32, i32
  }
}

module attributes {stable_mosaic.version = 11 : i64} {
  func.func @_conv_kernel(%arg0: i32, %arg1: memref<288x128xbf16, #tpu.memory_space<vmem>>, %arg2: memref<32x288xbf16, #tpu.memory_space<vmem>>, %arg3: memref<32x1xf32, #tpu.memory_space<vmem>>, %arg4: memref<32x1xf32, #tpu.memory_space<vmem>>, %arg5: memref<32x128xbf16, #tpu.memory_space<vmem>>) attributes {dimension_semantics = [#tpu.dimension_semantics<parallel>], iteration_bounds = array<i64: 1>, scalar_prefetch = 0 : i64, scratch_operands = 0 : i64, tpu.core_type = #tpu.core_type<tc>, window_params = [{transform_indices = @transform_0, window_bounds = array<i64: 288, 128>}, {pipeline_mode = #tpu.pipeline_mode<synchronous>, transform_indices = @transform_1, window_bounds = array<i64: 32, 288>}, {pipeline_mode = #tpu.pipeline_mode<synchronous>, transform_indices = @transform_2, window_bounds = array<i64: 32, 1>}, {pipeline_mode = #tpu.pipeline_mode<synchronous>, transform_indices = @transform_3, window_bounds = array<i64: 32, 1>}, {transform_indices = @transform_4, window_bounds = array<i64: 32, 128>}]} {
    %c0 = arith.constant 0 : index
    %c0_0 = arith.constant 0 : index
    %0 = vector.load %arg2[%c0, %c0_0] : memref<32x288xbf16, #tpu.memory_space<vmem>>, vector<32x288xbf16>
    %c0_1 = arith.constant 0 : index
    %c0_2 = arith.constant 0 : index
    %1 = vector.load %arg1[%c0_1, %c0_2] : memref<288x128xbf16, #tpu.memory_space<vmem>>, vector<288x128xbf16>
    %cst = arith.constant dense<0.000000e+00> : vector<32x128xf32>
    %2 = tpu.matmul %0, %1, %cst {dimension_numbers = #tpu.dot_dimension_numbers<[1], [0], [0], [1], [0, 0, 1, 1], [], []>} : vector<32x288xbf16>, vector<288x128xbf16>, vector<32x128xf32> -> vector<32x128xf32>
    %c0_3 = arith.constant 0 : index
    %c0_4 = arith.constant 0 : index
    %3 = vector.load %arg3[%c0_3, %c0_4] : memref<32x1xf32, #tpu.memory_space<vmem>>, vector<32x1xf32>
    %4 = vector.broadcast %3 : vector<32x1xf32> to vector<32x128xf32>
    %5 = arith.mulf %2, %4 : vector<32x128xf32>
    %c0_5 = arith.constant 0 : index
    %c0_6 = arith.constant 0 : index
    %6 = vector.load %arg4[%c0_5, %c0_6] : memref<32x1xf32, #tpu.memory_space<vmem>>, vector<32x1xf32>
    %7 = vector.broadcast %6 : vector<32x1xf32> to vector<32x128xf32>
    %8 = arith.addf %5, %7 : vector<32x128xf32>
    %cst_7 = arith.constant 0.000000e+00 : f32
    %9 = vector.broadcast %cst_7 : f32 to vector<32x128xf32>
    %10 = arith.cmpf ogt, %8, %9 : vector<32x128xf32>
    %cst_8 = arith.constant 1.000000e-01 : f32
    %11 = vector.broadcast %cst_8 : f32 to vector<32x128xf32>
    %12 = arith.mulf %11, %8 : vector<32x128xf32>
    %13 = arith.select %10, %8, %12 : vector<32x128xi1>, vector<32x128xf32>
    %14 = arith.truncf %13 : vector<32x128xf32> to vector<32x128xbf16>
    %c0_9 = arith.constant 0 : index
    %c0_10 = arith.constant 0 : index
    %15 = vector.load %arg5[%c0_9, %c0_10] : memref<32x128xbf16, #tpu.memory_space<vmem>>, vector<32x128xbf16>
    tpu.vector_store %arg5[%c0_9, %c0_10], %14 {strides = array<i32>} : memref<32x128xbf16, #tpu.memory_space<vmem>>, vector<32x128xbf16>,
    return
  }
  func.func @transform_0(%arg0: i32) -> (i32, i32) {
    %c0_i32 = arith.constant 0 : i32
    %c0_i32_0 = arith.constant 0 : i32
    return %c0_i32, %arg0 : i32, i32
  }
  func.func @transform_1(%arg0: i32) -> (i32, i32) {
    %c0_i32 = arith.constant 0 : i32
    %c0_i32_0 = arith.constant 0 : i32
    %c0_i32_1 = arith.constant 0 : i32
    return %c0_i32, %c0_i32_0 : i32, i32
  }
  func.func @transform_2(%arg0: i32) -> (i32, i32) {
    %c0_i32 = arith.constant 0 : i32
    %c0_i32_0 = arith.constant 0 : i32
    %c0_i32_1 = arith.constant 0 : i32
    return %c0_i32, %c0_i32_0 : i32, i32
  }
  func.func @transform_3(%arg0: i32) -> (i32, i32) {
    %c0_i32 = arith.constant 0 : i32
    %c0_i32_0 = arith.constant 0 : i32
    %c0_i32_1 = arith.constant 0 : i32
    return %c0_i32, %c0_i32_0 : i32, i32
  }
  func.func @transform_4(%arg0: i32) -> (i32, i32) {
    %c0_i32 = arith.constant 0 : i32
    %c0_i32_0 = arith.constant 0 : i32
    return %c0_i32, %arg0 : i32, i32
  }
}

module attributes {stable_mosaic.version = 11 : i64} {
  func.func @_conv_yolo_kernel(%arg0: i32, %arg1: memref<32x128xbf16, #tpu.memory_space<vmem>>, %arg2: memref<24x32xbf16, #tpu.memory_space<vmem>>, %arg3: memref<24x1xf32, #tpu.memory_space<vmem>>, %arg4: memref<24x1xf32, #tpu.memory_space<vmem>>, %arg5: memref<24x1xf32, #tpu.memory_space<vmem>>, %arg6: memref<24x1xf32, #tpu.memory_space<vmem>>, %arg7: memref<24x1xf32, #tpu.memory_space<vmem>>, %arg8: memref<24x1xf32, #tpu.memory_space<vmem>>, %arg9: memref<1x128xf32, #tpu.memory_space<vmem>>, %arg10: memref<1x128xf32, #tpu.memory_space<vmem>>, %arg11: memref<24x128xf32, #tpu.memory_space<vmem>>) attributes {dimension_semantics = [#tpu.dimension_semantics<parallel>], iteration_bounds = array<i64: 1>, scalar_prefetch = 0 : i64, scratch_operands = 0 : i64, tpu.core_type = #tpu.core_type<tc>, window_params = [{transform_indices = @transform_0, window_bounds = array<i64: 32, 128>}, {pipeline_mode = #tpu.pipeline_mode<synchronous>, transform_indices = @transform_1, window_bounds = array<i64: 24, 32>}, {pipeline_mode = #tpu.pipeline_mode<synchronous>, transform_indices = @transform_2, window_bounds = array<i64: 24, 1>}, {pipeline_mode = #tpu.pipeline_mode<synchronous>, transform_indices = @transform_3, window_bounds = array<i64: 24, 1>}, {pipeline_mode = #tpu.pipeline_mode<synchronous>, transform_indices = @transform_4, window_bounds = array<i64: 24, 1>}, {pipeline_mode = #tpu.pipeline_mode<synchronous>, transform_indices = @transform_5, window_bounds = array<i64: 24, 1>}, {pipeline_mode = #tpu.pipeline_mode<synchronous>, transform_indices = @transform_6, window_bounds = array<i64: 24, 1>}, {pipeline_mode = #tpu.pipeline_mode<synchronous>, transform_indices = @transform_7, window_bounds = array<i64: 24, 1>}, {transform_indices = @transform_8, window_bounds = array<i64: 1, 128>}, {transform_indices = @transform_9, window_bounds = array<i64: 1, 128>}, {transform_indices = @transform_10, window_bounds = array<i64: 24, 128>}]} {
    %c0 = arith.constant 0 : index
    %c0_0 = arith.constant 0 : index
    %0 = vector.load %arg2[%c0, %c0_0] : memref<24x32xbf16, #tpu.memory_space<vmem>>, vector<24x32xbf16>
    %c0_1 = arith.constant 0 : index
    %c0_2 = arith.constant 0 : index
    %1 = vector.load %arg1[%c0_1, %c0_2] : memref<32x128xbf16, #tpu.memory_space<vmem>>, vector<32x128xbf16>
    %cst = arith.constant dense<0.000000e+00> : vector<24x128xf32>
    %2 = tpu.matmul %0, %1, %cst {dimension_numbers = #tpu.dot_dimension_numbers<[1], [0], [0], [1], [0, 0, 1, 1], [], []>} : vector<24x32xbf16>, vector<32x128xbf16>, vector<24x128xf32> -> vector<24x128xf32>
    %c0_3 = arith.constant 0 : index
    %c0_4 = arith.constant 0 : index
    %3 = vector.load %arg3[%c0_3, %c0_4] : memref<24x1xf32, #tpu.memory_space<vmem>>, vector<24x1xf32>
    %4 = vector.broadcast %3 : vector<24x1xf32> to vector<24x128xf32>
    %5 = arith.mulf %2, %4 : vector<24x128xf32>
    %c0_5 = arith.constant 0 : index
    %c0_6 = arith.constant 0 : index
    %6 = vector.load %arg4[%c0_5, %c0_6] : memref<24x1xf32, #tpu.memory_space<vmem>>, vector<24x1xf32>
    %7 = vector.broadcast %6 : vector<24x1xf32> to vector<24x128xf32>
    %8 = arith.addf %5, %7 : vector<24x128xf32>
    %c0_7 = arith.constant 0 : index
    %c0_8 = arith.constant 0 : index
    %9 = vector.load %arg5[%c0_7, %c0_8] : memref<24x1xf32, #tpu.memory_space<vmem>>, vector<24x1xf32>
    %c0_9 = arith.constant 0 : index
    %c0_10 = arith.constant 0 : index
    %10 = vector.load %arg6[%c0_9, %c0_10] : memref<24x1xf32, #tpu.memory_space<vmem>>, vector<24x1xf32>
    %c0_11 = arith.constant 0 : index
    %c0_12 = arith.constant 0 : index
    %11 = vector.load %arg7[%c0_11, %c0_12] : memref<24x1xf32, #tpu.memory_space<vmem>>, vector<24x1xf32>
    %c0_13 = arith.constant 0 : index
    %c0_14 = arith.constant 0 : index
    %12 = vector.load %arg8[%c0_13, %c0_14] : memref<24x1xf32, #tpu.memory_space<vmem>>, vector<24x1xf32>
    %c0_15 = arith.constant 0 : index
    %c0_16 = arith.constant 0 : index
    %13 = vector.load %arg9[%c0_15, %c0_16] : memref<1x128xf32, #tpu.memory_space<vmem>>, vector<1x128xf32>
    %c0_17 = arith.constant 0 : index
    %c0_18 = arith.constant 0 : index
    %14 = vector.load %arg10[%c0_17, %c0_18] : memref<1x128xf32, #tpu.memory_space<vmem>>, vector<1x128xf32>
    %15 = vector.shape_cast %9 : vector<24x1xf32> to vector<24x1xf32>
    %16 = vector.broadcast %15 : vector<24x1xf32> to vector<24x128xf32>
    %17 = vector.shape_cast %10 : vector<24x1xf32> to vector<24x1xf32>
    %18 = vector.broadcast %17 : vector<24x1xf32> to vector<24x128xf32>
    %19 = vector.shape_cast %11 : vector<24x1xf32> to vector<24x1xf32>
    %20 = vector.broadcast %19 : vector<24x1xf32> to vector<24x128xf32>
    %21 = vector.shape_cast %12 : vector<24x1xf32> to vector<24x1xf32>
    %22 = vector.broadcast %21 : vector<24x1xf32> to vector<24x128xf32>
    %23 = vector.shape_cast %13 : vector<1x128xf32> to vector<1x128xf32>
    %24 = vector.broadcast %23 : vector<1x128xf32> to vector<24x128xf32>
    %25 = vector.shape_cast %14 : vector<1x128xf32> to vector<1x128xf32>
    %26 = vector.broadcast %25 : vector<1x128xf32> to vector<24x128xf32>
    %27 = arith.mulf %18, %24 : vector<24x128xf32>
    %28 = arith.mulf %20, %26 : vector<24x128xf32>
    %29 = arith.addf %27, %28 : vector<24x128xf32>
    %cst_19 = arith.constant 0.000000e+00 : f32
    %30 = vector.broadcast %cst_19 : f32 to vector<24x128xf32>
    %31 = arith.subf %30, %8 : vector<24x128xf32>
    %32 = math.exp %31 : vector<24x128xf32>
    %cst_20 = arith.constant 1.000000e+00 : f32
    %33 = vector.broadcast %cst_20 : f32 to vector<24x128xf32>
    %34 = arith.addf %33, %32 : vector<24x128xf32>
    %cst_21 = arith.constant 1.000000e+00 : f32
    %35 = vector.broadcast %cst_21 : f32 to vector<24x128xf32>
    %36 = arith.divf %35, %34 : vector<24x128xf32>
    %37 = arith.addf %36, %29 : vector<24x128xf32>
    %38 = arith.mulf %37, %16 : vector<24x128xf32>
    %39 = math.exp %8 : vector<24x128xf32>
    %40 = arith.mulf %39, %16 : vector<24x128xf32>
    %cst_22 = arith.constant 5.000000e-01 : f32
    %41 = vector.broadcast %cst_22 : f32 to vector<24x128xf32>
    %42 = arith.cmpf ogt, %22, %41 : vector<24x128xf32>
    %43 = arith.select %42, %40, %38 : vector<24x128xi1>, vector<24x128xf32>
    %c0_23 = arith.constant 0 : index
    %c0_24 = arith.constant 0 : index
    %44 = vector.load %arg11[%c0_23, %c0_24] : memref<24x128xf32, #tpu.memory_space<vmem>>, vector<24x128xf32>
    tpu.vector_store %arg11[%c0_23, %c0_24], %43 {strides = array<i32>} : memref<24x128xf32, #tpu.memory_space<vmem>>, vector<24x128xf32>,
    return
  }
  func.func @transform_0(%arg0: i32) -> (i32, i32) {
    %c0_i32 = arith.constant 0 : i32
    %c0_i32_0 = arith.constant 0 : i32
    return %c0_i32, %arg0 : i32, i32
  }
  func.func @transform_1(%arg0: i32) -> (i32, i32) {
    %c0_i32 = arith.constant 0 : i32
    %c0_i32_0 = arith.constant 0 : i32
    %c0_i32_1 = arith.constant 0 : i32
    return %c0_i32, %c0_i32_0 : i32, i32
  }
  func.func @transform_2(%arg0: i32) -> (i32, i32) {
    %c0_i32 = arith.constant 0 : i32
    %c0_i32_0 = arith.constant 0 : i32
    %c0_i32_1 = arith.constant 0 : i32
    return %c0_i32, %c0_i32_0 : i32, i32
  }
  func.func @transform_3(%arg0: i32) -> (i32, i32) {
    %c0_i32 = arith.constant 0 : i32
    %c0_i32_0 = arith.constant 0 : i32
    %c0_i32_1 = arith.constant 0 : i32
    return %c0_i32, %c0_i32_0 : i32, i32
  }
  func.func @transform_4(%arg0: i32) -> (i32, i32) {
    %c0_i32 = arith.constant 0 : i32
    %c0_i32_0 = arith.constant 0 : i32
    %c0_i32_1 = arith.constant 0 : i32
    return %c0_i32, %c0_i32_0 : i32, i32
  }
  func.func @transform_5(%arg0: i32) -> (i32, i32) {
    %c0_i32 = arith.constant 0 : i32
    %c0_i32_0 = arith.constant 0 : i32
    %c0_i32_1 = arith.constant 0 : i32
    return %c0_i32, %c0_i32_0 : i32, i32
  }
  func.func @transform_6(%arg0: i32) -> (i32, i32) {
    %c0_i32 = arith.constant 0 : i32
    %c0_i32_0 = arith.constant 0 : i32
    %c0_i32_1 = arith.constant 0 : i32
    return %c0_i32, %c0_i32_0 : i32, i32
  }
  func.func @transform_7(%arg0: i32) -> (i32, i32) {
    %c0_i32 = arith.constant 0 : i32
    %c0_i32_0 = arith.constant 0 : i32
    %c0_i32_1 = arith.constant 0 : i32
    return %c0_i32, %c0_i32_0 : i32, i32
  }
  func.func @transform_8(%arg0: i32) -> (i32, i32) {
    %c0_i32 = arith.constant 0 : i32
    %c0_i32_0 = arith.constant 0 : i32
    return %c0_i32, %arg0 : i32, i32
  }
  func.func @transform_9(%arg0: i32) -> (i32, i32) {
    %c0_i32 = arith.constant 0 : i32
    %c0_i32_0 = arith.constant 0 : i32
    return %c0_i32, %arg0 : i32, i32
  }
  func.func @transform_10(%arg0: i32) -> (i32, i32) {
    %c0_i32 = arith.constant 0 : i32
    %c0_i32_0 = arith.constant 0 : i32
    return %c0_i32, %arg0 : i32, i32
  }
}

module attributes {stable_mosaic.version = 11 : i64} {
  func.func @_conv_yolo_kernel(%arg0: i32, %arg1: memref<32x32xbf16, #tpu.memory_space<vmem>>, %arg2: memref<24x32xbf16, #tpu.memory_space<vmem>>, %arg3: memref<24x1xf32, #tpu.memory_space<vmem>>, %arg4: memref<24x1xf32, #tpu.memory_space<vmem>>, %arg5: memref<24x1xf32, #tpu.memory_space<vmem>>, %arg6: memref<24x1xf32, #tpu.memory_space<vmem>>, %arg7: memref<24x1xf32, #tpu.memory_space<vmem>>, %arg8: memref<24x1xf32, #tpu.memory_space<vmem>>, %arg9: memref<1x32xf32, #tpu.memory_space<vmem>>, %arg10: memref<1x32xf32, #tpu.memory_space<vmem>>, %arg11: memref<24x32xf32, #tpu.memory_space<vmem>>) attributes {dimension_semantics = [#tpu.dimension_semantics<parallel>], iteration_bounds = array<i64: 1>, scalar_prefetch = 0 : i64, scratch_operands = 0 : i64, tpu.core_type = #tpu.core_type<tc>, window_params = [{transform_indices = @transform_0, window_bounds = array<i64: 32, 32>}, {pipeline_mode = #tpu.pipeline_mode<synchronous>, transform_indices = @transform_1, window_bounds = array<i64: 24, 32>}, {pipeline_mode = #tpu.pipeline_mode<synchronous>, transform_indices = @transform_2, window_bounds = array<i64: 24, 1>}, {pipeline_mode = #tpu.pipeline_mode<synchronous>, transform_indices = @transform_3, window_bounds = array<i64: 24, 1>}, {pipeline_mode = #tpu.pipeline_mode<synchronous>, transform_indices = @transform_4, window_bounds = array<i64: 24, 1>}, {pipeline_mode = #tpu.pipeline_mode<synchronous>, transform_indices = @transform_5, window_bounds = array<i64: 24, 1>}, {pipeline_mode = #tpu.pipeline_mode<synchronous>, transform_indices = @transform_6, window_bounds = array<i64: 24, 1>}, {pipeline_mode = #tpu.pipeline_mode<synchronous>, transform_indices = @transform_7, window_bounds = array<i64: 24, 1>}, {transform_indices = @transform_8, window_bounds = array<i64: 1, 32>}, {transform_indices = @transform_9, window_bounds = array<i64: 1, 32>}, {transform_indices = @transform_10, window_bounds = array<i64: 24, 32>}]} {
    %c0 = arith.constant 0 : index
    %c0_0 = arith.constant 0 : index
    %0 = vector.load %arg2[%c0, %c0_0] : memref<24x32xbf16, #tpu.memory_space<vmem>>, vector<24x32xbf16>
    %c0_1 = arith.constant 0 : index
    %c0_2 = arith.constant 0 : index
    %1 = vector.load %arg1[%c0_1, %c0_2] : memref<32x32xbf16, #tpu.memory_space<vmem>>, vector<32x32xbf16>
    %cst = arith.constant dense<0.000000e+00> : vector<24x32xf32>
    %2 = tpu.matmul %0, %1, %cst {dimension_numbers = #tpu.dot_dimension_numbers<[1], [0], [0], [1], [0, 0, 1, 1], [], []>} : vector<24x32xbf16>, vector<32x32xbf16>, vector<24x32xf32> -> vector<24x32xf32>
    %c0_3 = arith.constant 0 : index
    %c0_4 = arith.constant 0 : index
    %3 = vector.load %arg3[%c0_3, %c0_4] : memref<24x1xf32, #tpu.memory_space<vmem>>, vector<24x1xf32>
    %4 = vector.broadcast %3 : vector<24x1xf32> to vector<24x32xf32>
    %5 = arith.mulf %2, %4 : vector<24x32xf32>
    %c0_5 = arith.constant 0 : index
    %c0_6 = arith.constant 0 : index
    %6 = vector.load %arg4[%c0_5, %c0_6] : memref<24x1xf32, #tpu.memory_space<vmem>>, vector<24x1xf32>
    %7 = vector.broadcast %6 : vector<24x1xf32> to vector<24x32xf32>
    %8 = arith.addf %5, %7 : vector<24x32xf32>
    %c0_7 = arith.constant 0 : index
    %c0_8 = arith.constant 0 : index
    %9 = vector.load %arg5[%c0_7, %c0_8] : memref<24x1xf32, #tpu.memory_space<vmem>>, vector<24x1xf32>
    %c0_9 = arith.constant 0 : index
    %c0_10 = arith.constant 0 : index
    %10 = vector.load %arg6[%c0_9, %c0_10] : memref<24x1xf32, #tpu.memory_space<vmem>>, vector<24x1xf32>
    %c0_11 = arith.constant 0 : index
    %c0_12 = arith.constant 0 : index
    %11 = vector.load %arg7[%c0_11, %c0_12] : memref<24x1xf32, #tpu.memory_space<vmem>>, vector<24x1xf32>
    %c0_13 = arith.constant 0 : index
    %c0_14 = arith.constant 0 : index
    %12 = vector.load %arg8[%c0_13, %c0_14] : memref<24x1xf32, #tpu.memory_space<vmem>>, vector<24x1xf32>
    %c0_15 = arith.constant 0 : index
    %c0_16 = arith.constant 0 : index
    %13 = vector.load %arg9[%c0_15, %c0_16] : memref<1x32xf32, #tpu.memory_space<vmem>>, vector<1x32xf32>
    %c0_17 = arith.constant 0 : index
    %c0_18 = arith.constant 0 : index
    %14 = vector.load %arg10[%c0_17, %c0_18] : memref<1x32xf32, #tpu.memory_space<vmem>>, vector<1x32xf32>
    %15 = vector.shape_cast %9 : vector<24x1xf32> to vector<24x1xf32>
    %16 = vector.broadcast %15 : vector<24x1xf32> to vector<24x32xf32>
    %17 = vector.shape_cast %10 : vector<24x1xf32> to vector<24x1xf32>
    %18 = vector.broadcast %17 : vector<24x1xf32> to vector<24x32xf32>
    %19 = vector.shape_cast %11 : vector<24x1xf32> to vector<24x1xf32>
    %20 = vector.broadcast %19 : vector<24x1xf32> to vector<24x32xf32>
    %21 = vector.shape_cast %12 : vector<24x1xf32> to vector<24x1xf32>
    %22 = vector.broadcast %21 : vector<24x1xf32> to vector<24x32xf32>
    %23 = vector.shape_cast %13 : vector<1x32xf32> to vector<1x32xf32>
    %24 = vector.broadcast %23 : vector<1x32xf32> to vector<24x32xf32>
    %25 = vector.shape_cast %14 : vector<1x32xf32> to vector<1x32xf32>
    %26 = vector.broadcast %25 : vector<1x32xf32> to vector<24x32xf32>
    %27 = arith.mulf %18, %24 : vector<24x32xf32>
    %28 = arith.mulf %20, %26 : vector<24x32xf32>
    %29 = arith.addf %27, %28 : vector<24x32xf32>
    %cst_19 = arith.constant 0.000000e+00 : f32
    %30 = vector.broadcast %cst_19 : f32 to vector<24x32xf32>
    %31 = arith.subf %30, %8 : vector<24x32xf32>
    %32 = math.exp %31 : vector<24x32xf32>
    %cst_20 = arith.constant 1.000000e+00 : f32
    %33 = vector.broadcast %cst_20 : f32 to vector<24x32xf32>
    %34 = arith.addf %33, %32 : vector<24x32xf32>
    %cst_21 = arith.constant 1.000000e+00 : f32
    %35 = vector.broadcast %cst_21 : f32 to vector<24x32xf32>
    %36 = arith.divf %35, %34 : vector<24x32xf32>
    %37 = arith.addf %36, %29 : vector<24x32xf32>
    %38 = arith.mulf %37, %16 : vector<24x32xf32>
    %39 = math.exp %8 : vector<24x32xf32>
    %40 = arith.mulf %39, %16 : vector<24x32xf32>
    %cst_22 = arith.constant 5.000000e-01 : f32
    %41 = vector.broadcast %cst_22 : f32 to vector<24x32xf32>
    %42 = arith.cmpf ogt, %22, %41 : vector<24x32xf32>
    %43 = arith.select %42, %40, %38 : vector<24x32xi1>, vector<24x32xf32>
    %c0_23 = arith.constant 0 : index
    %c0_24 = arith.constant 0 : index
    %44 = vector.load %arg11[%c0_23, %c0_24] : memref<24x32xf32, #tpu.memory_space<vmem>>, vector<24x32xf32>
    tpu.vector_store %arg11[%c0_23, %c0_24], %43 {strides = array<i32>} : memref<24x32xf32, #tpu.memory_space<vmem>>, vector<24x32xf32>,
    return
  }
  func.func @transform_0(%arg0: i32) -> (i32, i32) {
    %c0_i32 = arith.constant 0 : i32
    %c0_i32_0 = arith.constant 0 : i32
    return %c0_i32, %arg0 : i32, i32
  }
  func.func @transform_1(%arg0: i32) -> (i32, i32) {
    %c0_i32 = arith.constant 0 : i32
    %c0_i32_0 = arith.constant 0 : i32
    %c0_i32_1 = arith.constant 0 : i32
    return %c0_i32, %c0_i32_0 : i32, i32
  }
  func.func @transform_2(%arg0: i32) -> (i32, i32) {
    %c0_i32 = arith.constant 0 : i32
    %c0_i32_0 = arith.constant 0 : i32
    %c0_i32_1 = arith.constant 0 : i32
    return %c0_i32, %c0_i32_0 : i32, i32
  }
  func.func @transform_3(%arg0: i32) -> (i32, i32) {
    %c0_i32 = arith.constant 0 : i32
    %c0_i32_0 = arith.constant 0 : i32
    %c0_i32_1 = arith.constant 0 : i32
    return %c0_i32, %c0_i32_0 : i32, i32
  }
  func.func @transform_4(%arg0: i32) -> (i32, i32) {
    %c0_i32 = arith.constant 0 : i32
    %c0_i32_0 = arith.constant 0 : i32
    %c0_i32_1 = arith.constant 0 : i32
    return %c0_i32, %c0_i32_0 : i32, i32
  }
  func.func @transform_5(%arg0: i32) -> (i32, i32) {
    %c0_i32 = arith.constant 0 : i32
    %c0_i32_0 = arith.constant 0 : i32
    %c0_i32_1 = arith.constant 0 : i32
    return %c0_i32, %c0_i32_0 : i32, i32
  }
  func.func @transform_6(%arg0: i32) -> (i32, i32) {
    %c0_i32 = arith.constant 0 : i32
    %c0_i32_0 = arith.constant 0 : i32
    %c0_i32_1 = arith.constant 0 : i32
    return %c0_i32, %c0_i32_0 : i32, i32
  }
  func.func @transform_7(%arg0: i32) -> (i32, i32) {
    %c0_i32 = arith.constant 0 : i32
    %c0_i32_0 = arith.constant 0 : i32
    %c0_i32_1 = arith.constant 0 : i32
    return %c0_i32, %c0_i32_0 : i32, i32
  }
  func.func @transform_8(%arg0: i32) -> (i32, i32) {
    %c0_i32 = arith.constant 0 : i32
    %c0_i32_0 = arith.constant 0 : i32
    return %c0_i32, %arg0 : i32, i32
  }
  func.func @transform_9(%arg0: i32) -> (i32, i32) {
    %c0_i32 = arith.constant 0 : i32
    %c0_i32_0 = arith.constant 0 : i32
    return %c0_i32, %arg0 : i32, i32
  }
  func.func @transform_10(%arg0: i32) -> (i32, i32) {
    %c0_i32 = arith.constant 0 : i32
    %c0_i32_0 = arith.constant 0 : i32
    return %c0_i32, %arg0 : i32, i32
  }
}

</mosaic_0001>

<bundles_post_ra>
// kernel: _lambda_.13
= control target key start
LH: loop header
LB: loop body
LE: loop exit
PB: predicated region body
PF: predicated region fallthrough
CT: control target
= control target key end

     0   :  { %s78_s0 = inlined_call_operand.vmem [shape: bf16[8,128], index: 0, kind: input, shape index: {}]   ;;  %s79_s1 = inlined_call_operand.vmem [shape: bf16[8,128], index: 1, kind: input, shape index: {}]   ;;  %s80_s2 = inlined_call_operand.vmem [shape: bf16[8,128], index: 2, kind: input, shape index: {}]   ;;  %s81_s3 = inlined_call_operand.vmem [shape: bf16[8,128], index: 3, kind: input, shape index: {}]   ;;  %s82_s4 = inlined_call_operand.vmem [shape: bf16[8,128], index: 4, kind: output, shape index: {}]  }
   0x1   :  { %v17_v0 = vld [vmem:[%s78_s0] sm:$0xf] }
   0x2   :  { %v18_v1 = vld [vmem:[%s79_s1] sm:$0xf]  ;;  %v19_v3 = vunpack.c.l.bf16 %v17_v0 }
   0x3   :  { %v23_v2 = vld [vmem:[%s80_s2] sm:$0xf]  ;;  %v20_v4 = vunpack.c.l.bf16 %v18_v1 }
   0x4   :  { %v24_v5 = vld [vmem:[%s81_s3] sm:$0xf]  ;;  %v25_v6 = vunpack.c.l.bf16 %v23_v2 }
   0x5   :  { %v26_v7 = vunpack.c.l.bf16 %v24_v5  ;;  %v21_v8 = vmax.f32 %v19_v3, %v20_v4 }
   0x7   :  { %v27_v9 = vmax.f32 %v25_v6, %v26_v7 }
   0x9   :  { %v31_v10 = vmax.f32 %v21_v8, %v27_v9 }
   0xb   :  { %v32_v11 = vpack.c.bf16 %v31_v10, %v31_v10 }
   0xd   :  { %33 = vst [vmem:[%s82_s4] sm:$0xf] %v32_v11 }

// kernel: _lambda_.12
= control target key start
LH: loop header
LB: loop body
LE: loop exit
PB: predicated region body
PF: predicated region fallthrough
CT: control target
= control target key end

     0   :  { %v234_v2 = vmov 0   ;;  %vm83_vm0 = vcmask 1041408   ;;  %vm79_vm1 = vcmask 293888   ;;  %s333_s0 = inlined_call_operand.vmem [shape: bf16[36,512], index: 0, kind: input, shape index: {}]   ;;  %s334_s2 = inlined_call_operand.vmem [shape: f32[8,1], index: 2, kind: input, shape index: {}]   ;;  %s335_s3 = inlined_call_operand.vmem [shape: f32[8,1], index: 3, kind: input, shape index: {}]   ;;  %s336_s1 = inlined_call_operand.vmem [shape: bf16[8,36], index: 1, kind: input, shape index: {}]   ;;  %s337_s4 = inlined_call_operand.vmem [shape: bf16[8,512], index: 4, kind: output, shape index: {}]  }
   0x1   :  { %v27_v0 = vld [vmem:[%s333_s0 + $0x40] sm:$0x33]  ;;  %v28_v1 = vld [vmem:[%s333_s0 + $0x48] sm:$0x33]  ;;  %233 = vset.pattern.permute.xlu0 %v234_v2  ;;  %v230_v8 = vld [vmem:[%s333_s0 + $0x2c] sm:$0xf0] }
   0x2   :  { %v55_v3 = vunpack.c.l.b16 %v27_v0  ;;  %v56_v4 = vunpack.c.h.b16 %v27_v0  ;;  %v57_v5 = vunpack.c.l.b16 %v28_v1  ;;  %v58_v6 = vunpack.c.h.b16 %v28_v1  ;;  %v206_v7 = vld [vmem:[%s333_s0 + $0x20] sm:$0xf]  ;;  %v228_v13 = vld [vmem:[%s333_s0 + $0x24] sm:$0xf]  ;;  %v208_v14 = vld [vmem:[%s333_s0 + $0x30] sm:$0xf0] }
   0x3   :  { %v214_v15 = vld [vmem:[%s333_s0 + $0x28] sm:$0xf]  ;;  %v231_v16 = vld [vmem:[%s333_s0 + $0x34] sm:$0xf0]  ;;  %v229_v17 = vld [vmem:[%s333_s0 + $0x2c] sm:$0xf]  ;;  %v207_v23 = vor.u32 %v230_v8, %v206_v7  ;;  %v211_v24 = vor.u32 %v228_v13, %v208_v14 }
   0x4   :  { %v67_v9 = vpack.c.b16 %v55_v3, %v55_v3  ;;  %v68_v10 = vpack.c.b16 %v56_v4, %v56_v4  ;;  %v69_v11 = vpack.c.b16 %v57_v5, %v57_v5  ;;  %v70_v12 = vpack.c.b16 %v58_v6, %v58_v6  ;;  %v216_v18 = vld [vmem:[%s333_s0 + $0x38] sm:$0xf0]  ;;  %v190_v25 = vld [vmem:[%s333_s0] sm:$0xf]  ;;  %v226_v26 = vld [vmem:[%s333_s0 + $0xc] sm:$0xf0] }
   0x5   :  { %v224_v27 = vld [vmem:[%s333_s0 + $0x4] sm:$0xf]  ;;  %v215_v28 = vor.u32 %v231_v16, %v214_v15  ;;  %v219_v29 = vor.u32 %v229_v17, %v216_v18  ;;  %v192_v30 = vld [vmem:[%s333_s0 + $0x10] sm:$0xf0]  ;;  %v198_v31 = vld [vmem:[%s333_s0 + $0x8] sm:$0xf]  ;;  %v191_v36 = vor.u32 %v226_v26, %v190_v25 }
   0x6   :  { %v85_v19 = vsel %vm83_vm0, %v67_v9, 0  ;;  %v88_v20 = vsel %vm83_vm0, %v68_v10, 0  ;;  %v91_v21 = vsel %vm83_vm0, %v69_v11, 0  ;;  %v94_v22 = vsel %vm83_vm0, %v70_v12, 0  ;;  %v148_v32 = vld [vmem:[%s334_s2] sm:$0xff] }
   0x7   :  { %101 = vmatpush.bf16.msra.mxu0 %v85_v19  ;;  %114 = vmatpush.bf16.msra.mxu1 %v88_v20  ;;  %v227_v33 = vld [vmem:[%s333_s0 + $0x14] sm:$0xf0]  ;;  %v225_v34 = vld [vmem:[%s333_s0 + $0xc] sm:$0xf]  ;;  %v200_v35 = vld [vmem:[%s333_s0 + $0x18] sm:$0xf0]  ;;  %v195_v37 = vor.u32 %v224_v27, %v192_v30 }
   0x8   :  { %127 = vmatpush.bf16.msra.mxu2 %v91_v21  ;;  %140 = vmatpush.bf16.msra.mxu3 %v94_v22  ;;  %v199_v38 = vor.u32 %v227_v33, %v198_v31  ;;  %v203_v39 = vor.u32 %v225_v34, %v200_v35  ;;  %v158_v40 = vld [vmem:[%s335_s3] sm:$0xff] }
   0x9   :  { %151 = vperm.xlu0 %233, %v148_v32   ;;  %v18_v41 = vld [vmem:[%s336_s1] sm:$0xf] }
   0xb   :  { %102 = vmatpush.bf16.msra.mxu0 %v207_v23  ;;  %115 = vmatpush.bf16.msra.mxu1 %v211_v24 }
   0xc   :  { %128 = vmatpush.bf16.msra.mxu2 %v215_v28  ;;  %141 = vmatpush.bf16.msra.mxu3 %v219_v29 }
   0xf   :  { %103 = vmatpush.bf16.msra.mxu0 %v191_v36  ;;  %116 = vmatpush.bf16.msra.mxu1 %v195_v37 }
  0x10   :  { %129 = vmatpush.bf16.msra.mxu2 %v199_v38  ;;  %142 = vmatpush.bf16.msra.mxu3 %v203_v39 }
  0x11   :  { %161 = vperm.xlu0 %233, %v158_v40  }
  0x12   :  { %220 = vmatmul.msk.bf16.vlgmr.msra.gmra.mxu0 %vm79_vm1, %v18_v41  ;;  %221 = vmatmul.msk.bf16.vlgmr.msra.gmra.mxu1 %vm79_vm1, %v18_v41 }
  0x13   :  { %222 = vmatmul.msk.bf16.vlgmr.msra.gmra.mxu2 %vm79_vm1, %v18_v41  ;;  %223 = vmatmul.msk.bf16.vlgmr.msra.gmra.mxu3 %vm79_vm1, %v18_v41 }
  0x7b   :  { %v152_v42 = vpop.permute.xlu0 %151 }
  0x83   :  { %v162_v47 = vpop.permute.xlu0 %161 }
  0x8f   :  { %v105_v43 = vpop.f32.mrf.mxu0  ;;  %v118_v44 = vpop.f32.mrf.mxu1 }
  0x90   :  { %v154_v45 = vmul.f32 %v152_v42, %v105_v43  ;;  %v155_v46 = vmul.f32 %v152_v42, %v118_v44 }
  0x92   :  { %v164_v48 = vadd.f32 %v162_v47, %v154_v45  ;;  %v165_v49 = vadd.f32 %v162_v47, %v155_v46 }
  0x94   :  { %vm168_vm2 = vcmp.gt.f32.partialorder %v164_v48, 0.0  ;;  %v172_v50 = vmul.f32 0.1, %v164_v48  ;;  %vm169_vm3 = vcmp.gt.f32.partialorder %v165_v49, 0.0  ;;  %v173_v51 = vmul.f32 0.1, %v165_v49 }
  0x96   :  { %v176_v52 = vsel %vm168_vm2, %v164_v48, %v172_v50  ;;  %v177_v53 = vsel %vm169_vm3, %v165_v49, %v173_v51  ;;  %v131_v54 = vpop.f32.mrf.mxu2  ;;  %v144_v55 = vpop.f32.mrf.mxu3 }
  0x97   :  { %v180_v56 = vpack.c.bf16 %v177_v53, %v176_v52  ;;  %v156_v57 = vmul.f32 %v152_v42, %v131_v54  ;;  %v157_v58 = vmul.f32 %v152_v42, %v144_v55  ;;  %v107_v59 = vpop.f32.mrf.mxu0  ;;  %v120_v60 = vpop.f32.mrf.mxu1 }
  0x99   :  { %182 = vst [vmem:[%s337_s4] sm:$0xff] %v180_v56  ;;  %v166_v61 = vadd.f32 %v162_v47, %v156_v57  ;;  %v167_v62 = vadd.f32 %v162_v47, %v157_v58 }
  0x9b   :  { %vm170_vm4 = vcmp.gt.f32.partialorder %v166_v61, 0.0  ;;  %v174_v63 = vmul.f32 0.1, %v166_v61  ;;  %vm171_vm5 = vcmp.gt.f32.partialorder %v167_v62, 0.0  ;;  %v175_v0 = vmul.f32 0.1, %v167_v62 }
  0x9d   :  { %v178_v1 = vsel %vm170_vm4, %v166_v61, %v174_v63  ;;  %v179_v2 = vsel %vm171_vm5, %v167_v62, %v175_v0 }
  0x9e   :  { %v181_v3 = vpack.c.bf16 %v179_v2, %v178_v1  ;;  %v133_v4 = vpop.f32.mrf.mxu2  ;;  %v146_v5 = vpop.f32.mrf.mxu3 }
  0xa0   :  { %183 = vst [vmem:[%s337_s4 + $0x8] sm:$0xff] %v181_v3 }

// kernel: _lambda_.14
= control target key start
LH: loop header
LB: loop body
LE: loop exit
PB: predicated region body
PF: predicated region fallthrough
CT: control target
= control target key end

     0   :  { %v159_v1 = vmov 0   ;;  %vm65_vm0 = vcmask 1043456   ;;  %vm61_vm1 = vcmask 588800   ;;  %s218_s0 = inlined_call_operand.vmem [shape: bf16[72,128], index: 0, kind: input, shape index: {}]   ;;  %s219_s2 = inlined_call_operand.vmem [shape: f32[16,1], index: 2, kind: input, shape index: {}]   ;;  %s220_s3 = inlined_call_operand.vmem [shape: f32[16,1], index: 3, kind: input, shape index: {}]   ;;  %s221_s1 = inlined_call_operand.vmem [shape: bf16[16,72], index: 1, kind: input, shape index: {}]   ;;  %s222_s4 = inlined_call_operand.vmem [shape: bf16[16,128], index: 4, kind: output, shape index: {}]  }
   0x1   :  { %v28_v0 = vld [vmem:[%s218_s0 + $0x20] sm:$0xf]  ;;  %157 = vset.pattern.permute.xlu0 %v159_v1  ;;  %158 = vset.pattern.permute.xlu1 %v159_v1  ;;  %v150_v7 = vld [vmem:[%s218_s0 + $0x18] sm:$0xff]  ;;  %v84_v8 = vld [vmem:[%s219_s2 + $0x8] sm:$0xff] }
   0x2   :  { %v51_v2 = vunpack.c.l.b16 %v28_v0  ;;  %v83_v3 = vld [vmem:[%s219_s2] sm:$0xff]  ;;  %v98_v9 = vld [vmem:[%s220_s3 + $0x8] sm:$0xff]  ;;  %v149_v10 = vld [vmem:[%s218_s0 + $0x10] sm:$0xff] }
   0x3   :  { %v97_v4 = vld [vmem:[%s220_s3] sm:$0xff]  ;;  %87 = vperm.xlu0 %157, %v83_v3   ;;  %v148_v11 = vld [vmem:[%s218_s0 + $0x8] sm:$0xff] }
   0x4   :  { %v56_v5 = vpack.c.b16 %v51_v2, %v51_v2  ;;  %101 = vperm.xlu1 %158, %v97_v4   ;;  %v147_v12 = vld [vmem:[%s218_s0] sm:$0xff] }
   0x5   :  { %v146_v13 = vld [vmem:[%s221_s1] sm:$0xff] }
   0x6   :  { %v67_v6 = vsel %vm65_vm0, %v56_v5, 0 }
   0x7   :  { %72 = vmatpush.bf16.msra.mxu0 %v67_v6 }
   0xb   :  { %73 = vmatpush.bf16.msra.mxu0 %v150_v7  ;;  %92 = vperm.xlu0 %157, %v84_v8  }
   0xc   :  { %106 = vperm.xlu1 %158, %v98_v9  }
   0xf   :  { %74 = vmatpush.bf16.msra.mxu0 %v149_v10 }
  0x13   :  { %75 = vmatpush.bf16.msra.mxu0 %v148_v11 }
  0x17   :  { %76 = vmatpush.bf16.msra.mxu0 %v147_v12 }
  0x1a   :  { %145 = vmatmul.msk.bf16.vlgmr.msra.gmra.mxu0 %vm61_vm1, %v146_v13 }
  0x75   :  { %v88_v14 = vpop.permute.xlu0 %87 }
  0x76   :  { %v102_v15 = vpop.permute.xlu1 %101 }
  0x7d   :  { %v93_v19 = vpop.permute.xlu0 %92 }
  0x7e   :  { %v107_v22 = vpop.permute.xlu1 %106 }
  0x97   :  { %v78_v16 = vpop.f32.mrf.mxu0 }
  0x98   :  { %v95_v17 = vmul.f32 %v88_v14, %v78_v16 }
  0x9a   :  { %v109_v18 = vadd.f32 %v102_v15, %v95_v17 }
  0x9c   :  { %v113_v23 = vmul.f32 0.1, %v109_v18  ;;  %vm111_vm2 = vcmp.gt.f32.partialorder %v109_v18, 0.0 }
  0x9e   :  { %v115_v26 = vsel %vm111_vm2, %v109_v18, %v113_v23 }
  0x9f   :  { %v80_v20 = vpop.f32.mrf.mxu0 }
  0xa0   :  { %v96_v21 = vmul.f32 %v93_v19, %v80_v20 }
  0xa2   :  { %v110_v24 = vadd.f32 %v107_v22, %v96_v21 }
  0xa4   :  { %vm112_vm3 = vcmp.gt.f32.partialorder %v110_v24, 0.0  ;;  %v114_v25 = vmul.f32 0.1, %v110_v24 }
  0xa6   :  { %v116_v27 = vsel %vm112_vm3, %v110_v24, %v114_v25 }
  0xa7   :  { %v154_v28 = vpack.c.bf16 %v116_v27, %v115_v26 }
  0xa9   :  { %155 = vst [vmem:[%s222_s4] sm:$0xff] %v154_v28  }

// kernel: _lambda_.16
= control target key start
LH: loop header
LB: loop body
LE: loop exit
PB: predicated region body
PF: predicated region fallthrough
CT: control target
= control target key end

     0   :  { %vm49_vm0 = vcmask 257024   ;;  %s115_s0 = inlined_call_operand.vmem [shape: bf16[16,32], index: 0, kind: input, shape index: {}]   ;;  %s116_s1 = inlined_call_operand.vmem [shape: bf16[16,32], index: 1, kind: input, shape index: {}]   ;;  %s117_s2 = inlined_call_operand.vmem [shape: bf16[16,32], index: 2, kind: input, shape index: {}]   ;;  %s118_s3 = inlined_call_operand.vmem [shape: bf16[16,32], index: 3, kind: input, shape index: {}]   ;;  %s119_s4 = inlined_call_operand.vmem [shape: bf16[16,32], index: 4, kind: output, shape index: {}]  }
   0x1   :  { %v57_v0 = vld [vmem:[%s115_s0] sm:$0xff]  }
   0x2   :  { %v61_v1 = vld [vmem:[%s116_s1] sm:$0xff]   ;;  %v58_v3 = vunpack.c.l.bf16 %v57_v0  ;;  %v59_v7 = vunpack.c.h.bf16 %v57_v0 }
   0x3   :  { %v65_v2 = vld [vmem:[%s117_s2] sm:$0xff]   ;;  %v62_v4 = vunpack.c.l.bf16 %v61_v1  ;;  %v63_v9 = vunpack.c.h.bf16 %v61_v1 }
   0x4   :  { %v66_v5 = vunpack.c.l.bf16 %v65_v2  ;;  %v69_v6 = vld [vmem:[%s118_s3] sm:$0xff]   ;;  %v67_v10 = vunpack.c.h.bf16 %v65_v2 }
   0x5   :  { %v70_v8 = vunpack.c.l.bf16 %v69_v6  ;;  %v71_v11 = vunpack.c.h.bf16 %v69_v6  ;;  %v25_v12 = vmax.f32 %v58_v3, %v62_v4  ;;  %v26_v14 = vmax.f32 %v59_v7, %v63_v9 }
   0x7   :  { %v37_v13 = vmax.f32 %v66_v5, %v70_v8  ;;  %v38_v15 = vmax.f32 %v67_v10, %v71_v11 }
   0x9   :  { %v45_v16 = vmax.f32 %v25_v12, %v37_v13  ;;  %v46_v17 = vmax.f32 %v26_v14, %v38_v15 }
   0xb   :  { %v47_v18 = vpack.c.bf16 %v45_v16, %v45_v16  ;;  %v48_v19 = vpack.c.bf16 %v46_v17, %v46_v17 }
   0xd   :  { %50 = vst.msk [vmem:[%s119_s4] sm:$0xf] %vm49_vm0, %v47_v18 }
   0xe   :  { %51 = vst.msk [vmem:[%s119_s4 + $0x4] sm:$0xf] %vm49_vm0, %v48_v19 }

// kernel: _lambda_.18
= control target key start
LH: loop header
LB: loop body
LE: loop exit
PB: predicated region body
PF: predicated region fallthrough
CT: control target
= control target key end

     0   :  { %v121_v1 = vmov 0   ;;  %vm41_vm0 = vcmask 261120   ;;  %vm95_vm2 = vcmask 257024   ;;  %s174_s0 = inlined_call_operand.vmem [shape: bf16[32,32], index: 0, kind: input, shape index: {}]   ;;  %s175_s2 = inlined_call_operand.vmem [shape: f32[16,1], index: 2, kind: input, shape index: {}]   ;;  %s176_s3 = inlined_call_operand.vmem [shape: f32[16,1], index: 3, kind: input, shape index: {}]   ;;  %s177_s1 = inlined_call_operand.vmem [shape: bf16[16,32], index: 1, kind: input, shape index: {}]   ;;  %s178_s4 = inlined_call_operand.vmem [shape: bf16[16,32], index: 4, kind: output, shape index: {}]  }
   0x1   :  { %v117_v0 = vld [vmem:[%s174_s0 + $0x8] sm:$0xff]  ;;  %119 = vset.pattern.permute.xlu0 %v121_v1  ;;  %120 = vset.pattern.permute.xlu1 %v121_v1  ;;  %v59_v2 = vld [vmem:[%s175_s2] sm:$0xff] }
   0x2   :  { %v73_v3 = vld [vmem:[%s176_s3] sm:$0xff]  ;;  %51 = vmatpush.bf16.msra.mxu0 %v117_v0  ;;  %63 = vperm.xlu0 %119, %v59_v2   ;;  %v60_v6 = vld [vmem:[%s175_s2 + $0x8] sm:$0xff] }
   0x3   :  { %v116_v4 = vld [vmem:[%s174_s0] sm:$0xff]  ;;  %77 = vperm.xlu1 %120, %v73_v3   ;;  %v74_v7 = vld [vmem:[%s176_s3 + $0x8] sm:$0xff] }
   0x4   :  { %v115_v5 = vld [vmem:[%s177_s1] sm:$0xff] }
   0x6   :  { %52 = vmatpush.bf16.msra.mxu0 %v116_v4 }
   0x9   :  { %114 = vmatmul.msk.bf16.vlgmr.msra.gmra.mxu0 %vm41_vm0, %v115_v5 }
   0xa   :  { %68 = vperm.xlu0 %119, %v60_v6  }
   0xb   :  { %82 = vperm.xlu1 %120, %v74_v7  }
  0x74   :  { %v64_v8 = vpop.permute.xlu0 %63 }
  0x75   :  { %v78_v9 = vpop.permute.xlu1 %77 }
  0x7c   :  { %v69_v15 = vpop.permute.xlu0 %68 }
  0x7d   :  { %v83_v19 = vpop.permute.xlu1 %82 }
  0x86   :  { %v54_v10 = vpop.f32.mrf.mxu0 }
  0x87   :  { %v71_v11 = vmul.f32 %v64_v8, %v54_v10 }
  0x89   :  { %v85_v12 = vadd.f32 %v78_v9, %v71_v11 }
  0x8b   :  { %vm87_vm1 = vcmp.gt.f32.partialorder %v85_v12, 0.0  ;;  %v89_v13 = vmul.f32 0.1, %v85_v12 }
  0x8d   :  { %v91_v14 = vsel %vm87_vm1, %v85_v12, %v89_v13 }
  0x8e   :  { %v93_v16 = vpack.c.bf16 %v91_v14, %v91_v14  ;;  %v56_v17 = vpop.f32.mrf.mxu0 }
  0x8f   :  { %v72_v18 = vmul.f32 %v69_v15, %v56_v17 }
  0x90   :  { %96 = vst.msk [vmem:[%s178_s4] sm:$0xf] %vm95_vm2, %v93_v16 }
  0x91   :  { %v86_v20 = vadd.f32 %v83_v19, %v72_v18 }
  0x93   :  { %vm88_vm3 = vcmp.gt.f32.partialorder %v86_v20, 0.0  ;;  %v90_v21 = vmul.f32 0.1, %v86_v20 }
  0x95   :  { %v92_v22 = vsel %vm88_vm3, %v86_v20, %v90_v21 }
  0x96   :  { %v94_v23 = vpack.c.bf16 %v92_v22, %v92_v22 }
  0x98   :  { %97 = vst.msk [vmem:[%s178_s4 + $0x4] sm:$0xf] %vm95_vm2, %v94_v23 }

// kernel: _lambda_.17
= control target key start
LH: loop header
LB: loop body
LE: loop exit
PB: predicated region body
PF: predicated region fallthrough
CT: control target
= control target key end

     0   :  { %v317_v1 = vmov 0   ;;  %vm112_vm0 = vcmask 130048   ;;  %vm229_vm2 = vcmask 257024   ;;  %s436_s0 = inlined_call_operand.vmem [shape: bf16[144,32], index: 0, kind: input, shape index: {}]   ;;  %s437_s1 = inlined_call_operand.vmem [shape: bf16[32,144], index: 1, kind: input, shape index: {}]   ;;  %s438_s2 = inlined_call_operand.vmem [shape: f32[32,1], index: 2, kind: input, shape index: {}]   ;;  %s439_s3 = inlined_call_operand.vmem [shape: f32[32,1], index: 3, kind: input, shape index: {}]   ;;  %s440_s4 = inlined_call_operand.vmem [shape: bf16[32,32], index: 4, kind: output, shape index: {}]  }
   0x1   :  { %v303_v0 = vld [vmem:[%s436_s0 + $0x38] sm:$0xff]  ;;  %315 = vset.pattern.permute.xlu1 %v317_v1  ;;  %314 = vset.pattern.permute.xlu0 %v317_v1  ;;  %v304_v2 = vld [vmem:[%s436_s0 + $0x40] sm:$0xff]  ;;  %v302_v4 = vld [vmem:[%s436_s0 + $0x30] sm:$0xff] }
   0x2   :  { %v292_v3 = vld [vmem:[%s437_s1 + $0x4] sm:$0xf]  ;;  %316 = vset.pattern.permute.xlu2 %v317_v1  ;;  %119 = vmatpush.bf16.msra.mxu0 %v303_v0  ;;  %v242_v5 = vld [vmem:[%s437_s1 + $0x8] sm:$0xf0]  ;;  %v159_v7 = vld [vmem:[%s438_s2 + $0x10] sm:$0xff] }
   0x3   :  { %305 = vmatpush.bf16.msra.mxu2 %v303_v0  ;;  %145 = vmatpush.bf16.msra.mxu1 %v304_v2  ;;  %v245_v6 = vor.u32 %v292_v3, %v242_v5  ;;  %v157_v8 = vld [vmem:[%s438_s2] sm:$0xff]  ;;  %v301_v9 = vld [vmem:[%s436_s0 + $0x28] sm:$0xff]  ;;  %v160_v11 = vld [vmem:[%s438_s2 + $0x18] sm:$0xff] }
   0x4   :  { %173 = vperm.xlu1 %315, %v159_v7   ;;  %163 = vperm.xlu0 %314, %v157_v8   ;;  %v185_v10 = vld [vmem:[%s439_s3] sm:$0xff]  ;;  %v158_v12 = vld [vmem:[%s438_s2 + $0x8] sm:$0xff]  ;;  %v299_v15 = vld [vmem:[%s436_s0 + $0x18] sm:$0xff] }
   0x5   :  { %191 = vperm.xlu2 %316, %v185_v10   ;;  %v300_v13 = vld [vmem:[%s436_s0 + $0x20] sm:$0xff]  ;;  %v186_v14 = vld [vmem:[%s439_s3 + $0x8] sm:$0xff]  ;;  %v294_v16 = vld [vmem:[%s437_s1 + $0x14] sm:$0xf] }
   0x6   :  { %120 = vmatpush.bf16.msra.mxu0 %v302_v4  ;;  %290 = vmatmul.msk.bf16.vlgmr.msra.gmra.mxu1 %vm112_vm0, %v245_v6  ;;  %v250_v17 = vld [vmem:[%s437_s1 + $0x18] sm:$0xf0]  ;;  %v187_v19 = vld [vmem:[%s439_s3 + $0x10] sm:$0xff]  ;;  %v297_v22 = vld [vmem:[%s436_s0 + $0x8] sm:$0xff] }
   0x7   :  { %306 = vmatpush.bf16.msra.mxu2 %v302_v4  ;;  %v188_v18 = vld [vmem:[%s439_s3 + $0x18] sm:$0xff]  ;;  %v298_v20 = vld [vmem:[%s436_s0 + $0x10] sm:$0xff]  ;;  %v253_v21 = vor.u32 %v294_v16, %v250_v17  ;;  %v296_v23 = vld [vmem:[%s436_s0] sm:$0xff] }
   0x8   :  { %v240_v24 = vld [vmem:[%s437_s1] sm:$0xf]  ;;  %v293_v25 = vld [vmem:[%s437_s1 + $0x4] sm:$0xf0]  ;;  %v248_v26 = vld [vmem:[%s437_s1 + $0x10] sm:$0xf] }
   0x9   :  { %v295_v27 = vld [vmem:[%s437_s1 + $0x14] sm:$0xf0]  ;;  %v241_v28 = vor.u32 %v293_v25, %v240_v24 }
   0xa   :  { %121 = vmatpush.bf16.msra.mxu0 %v301_v9  ;;  %v249_v29 = vor.u32 %v295_v27, %v248_v26 }
   0xb   :  { %307 = vmatpush.bf16.msra.mxu2 %v301_v9 }
   0xc   :  { %178 = vperm.xlu1 %315, %v160_v11   ;;  %168 = vperm.xlu0 %314, %v158_v12  }
   0xd   :  { %196 = vperm.xlu2 %316, %v186_v14  }
   0xe   :  { %122 = vmatpush.bf16.msra.mxu0 %v300_v13 }
   0xf   :  { %308 = vmatpush.bf16.msra.mxu2 %v300_v13 }
  0x12   :  { %123 = vmatpush.bf16.msra.mxu0 %v299_v15 }
  0x13   :  { %309 = vmatpush.bf16.msra.mxu2 %v299_v15 }
  0x14   :  { %206 = vperm.xlu1 %315, %v188_v18   ;;  %201 = vperm.xlu0 %314, %v187_v19  }
  0x16   :  { %124 = vmatpush.bf16.msra.mxu0 %v298_v20  ;;  %291 = vmatmul.msk.bf16.gmra.mxu1 %vm112_vm0, %v253_v21 }
  0x17   :  { %310 = vmatpush.bf16.msra.mxu2 %v298_v20 }
  0x1a   :  { %125 = vmatpush.bf16.msra.mxu0 %v297_v22 }
  0x1b   :  { %311 = vmatpush.bf16.msra.mxu2 %v297_v22 }
  0x1e   :  { %126 = vmatpush.bf16.msra.mxu0 %v296_v23 }
  0x1f   :  { %312 = vmatpush.bf16.msra.mxu2 %v296_v23 }
  0x21   :  { %127 = vmatmul.bf16.vlgmr.msra.gmra.mxu0 %v241_v28 }
  0x22   :  { %132 = vmatmul.bf16.vlgmr.msra.gmra.mxu2 %v249_v29 }
  0x5f   :  { %v192_v37 = vpop.permute.xlu2 %191 }
  0x67   :  { %v197_v53 = vpop.permute.xlu2 %196 }
  0x76   :  { %v164_v31 = vpop.permute.xlu0 %163  ;;  %v174_v33 = vpop.permute.xlu1 %173 }
  0x7e   :  { %v169_v34 = vpop.permute.xlu0 %168  ;;  %v179_v44 = vpop.permute.xlu1 %178 }
  0x83   :  { %v147_v30 = vpop.f32.mrf.mxu1 }
  0x86   :  { %v202_v50 = vpop.permute.xlu0 %201  ;;  %v207_v0 = vpop.permute.xlu1 %206 }
  0x8b   :  { %v149_v32 = vpop.f32.mrf.mxu1 }
  0x93   :  { %v152_v39 = vpop.f32.mrf.mxu1 }
  0x9b   :  { %v154_v56 = vpop.f32.mrf.mxu1 }
  0x9e   :  { %v128_v35 = vpop.f32.mrf.mxu0 }
  0x9f   :  { %v148_v36 = vadd.f32 %v147_v30, %v128_v35 }
  0xa1   :  { %v181_v38 = vmul.f32 %v164_v31, %v148_v36 }
  0xa3   :  { %v209_v40 = vadd.f32 %v192_v37, %v181_v38 }
  0xa5   :  { %v133_v41 = vpop.f32.mrf.mxu2  ;;  %vm213_vm1 = vcmp.gt.f32.partialorder %v209_v40, 0.0  ;;  %v217_v42 = vmul.f32 0.1, %v209_v40 }
  0xa6   :  { %v153_v43 = vadd.f32 %v152_v39, %v133_v41  ;;  %v130_v45 = vpop.f32.mrf.mxu0 }
  0xa7   :  { %v221_v46 = vsel %vm213_vm1, %v209_v40, %v217_v42  ;;  %v150_v48 = vadd.f32 %v149_v32, %v130_v45 }
  0xa8   :  { %v183_v47 = vmul.f32 %v174_v33, %v153_v43  ;;  %v225_v49 = vpack.c.bf16 %v221_v46, %v221_v46 }
  0xa9   :  { %v182_v52 = vmul.f32 %v169_v34, %v150_v48 }
  0xaa   :  { %v211_v51 = vadd.f32 %v202_v50, %v183_v47  ;;  %230 = vst.msk [vmem:[%s440_s4] sm:$0xf] %vm229_vm2, %v225_v49 }
  0xab   :  { %v210_v55 = vadd.f32 %v197_v53, %v182_v52 }
  0xac   :  { %vm215_vm3 = vcmp.gt.f32.partialorder %v211_v51, 0.0  ;;  %v219_v54 = vmul.f32 0.1, %v211_v51 }
  0xad   :  { %v135_v57 = vpop.f32.mrf.mxu2  ;;  %vm214_vm4 = vcmp.gt.f32.partialorder %v210_v55, 0.0  ;;  %v218_v59 = vmul.f32 0.1, %v210_v55 }
  0xae   :  { %v223_v58 = vsel %vm215_vm3, %v211_v51, %v219_v54  ;;  %v155_v60 = vadd.f32 %v154_v56, %v135_v57 }
  0xaf   :  { %v227_v61 = vpack.c.bf16 %v223_v58, %v223_v58  ;;  %v222_v62 = vsel %vm214_vm4, %v210_v55, %v218_v59 }
  0xb0   :  { %v184_v63 = vmul.f32 %v179_v44, %v155_v60  ;;  %v226_v1 = vpack.c.bf16 %v222_v62, %v222_v62 }
  0xb1   :  { %232 = vst.msk [vmem:[%s440_s4 + $0x8] sm:$0xf] %vm229_vm2, %v227_v61 }
  0xb2   :  { %v212_v2 = vadd.f32 %v207_v0, %v184_v63  ;;  %231 = vst.msk [vmem:[%s440_s4 + $0x4] sm:$0xf] %vm229_vm2, %v226_v1 }
  0xb4   :  { %vm216_vm5 = vcmp.gt.f32.partialorder %v212_v2, 0.0  ;;  %v220_v3 = vmul.f32 0.1, %v212_v2 }
  0xb6   :  { %v224_v4 = vsel %vm216_vm5, %v212_v2, %v220_v3 }
  0xb7   :  { %v228_v5 = vpack.c.bf16 %v224_v4, %v224_v4 }
  0xb9   :  { %233 = vst.msk [vmem:[%s440_s4 + $0xc] sm:$0xf] %vm229_vm2, %v228_v5 }

// kernel: _lambda_.19
= control target key start
LH: loop header
LB: loop body
LE: loop exit
PB: predicated region body
PF: predicated region fallthrough
CT: control target
= control target key end

     0   :  { %v355_v1 = vmov 0   ;;  %vm117_vm0 = vcmask 130048   ;;  %vm234_vm2 = vcmask 257024   ;;  %s506_s0 = inlined_call_operand.vmem [shape: bf16[144,32], index: 0, kind: input, shape index: {}]   ;;  %s507_s1 = inlined_call_operand.vmem [shape: bf16[32,144], index: 1, kind: input, shape index: {}]   ;;  %s508_s2 = inlined_call_operand.vmem [shape: f32[32,1], index: 2, kind: input, shape index: {}]   ;;  %s509_s3 = inlined_call_operand.vmem [shape: f32[32,1], index: 3, kind: input, shape index: {}]   ;;  %s510_s4 = inlined_call_operand.vmem [shape: bf16[32,32], index: 4, kind: input, shape index: {}]   ;;  %s511_s5 = inlined_call_operand.vmem [shape: bf16[32,32], index: 5, kind: output, shape index: {0}]   ;;  %s512_s6 = inlined_call_operand.vmem [shape: bf16[32,32], index: 6, kind: output, shape index: {1}]  }
   0x1   :  { %v332_v0 = vld [vmem:[%s506_s0 + $0x38] sm:$0xff]  ;;  %353 = vset.pattern.permute.xlu1 %v355_v1  ;;  %352 = vset.pattern.permute.xlu0 %v355_v1  ;;  %v333_v2 = vld [vmem:[%s506_s0 + $0x40] sm:$0xff]  ;;  %v331_v4 = vld [vmem:[%s506_s0 + $0x30] sm:$0xff] }
   0x2   :  { %v321_v3 = vld [vmem:[%s507_s1 + $0x4] sm:$0xf]  ;;  %354 = vset.pattern.permute.xlu2 %v355_v1  ;;  %124 = vmatpush.bf16.msra.mxu0 %v332_v0  ;;  %v271_v5 = vld [vmem:[%s507_s1 + $0x8] sm:$0xf0]  ;;  %v164_v7 = vld [vmem:[%s508_s2 + $0x10] sm:$0xff] }
   0x3   :  { %343 = vmatpush.bf16.msra.mxu2 %v332_v0  ;;  %150 = vmatpush.bf16.msra.mxu1 %v333_v2  ;;  %v274_v6 = vor.u32 %v321_v3, %v271_v5  ;;  %v162_v8 = vld [vmem:[%s508_s2] sm:$0xff]  ;;  %v330_v9 = vld [vmem:[%s506_s0 + $0x28] sm:$0xff]  ;;  %v165_v11 = vld [vmem:[%s508_s2 + $0x18] sm:$0xff] }
   0x4   :  { %178 = vperm.xlu1 %353, %v164_v7   ;;  %168 = vperm.xlu0 %352, %v162_v8   ;;  %v190_v10 = vld [vmem:[%s509_s3] sm:$0xff]  ;;  %v163_v12 = vld [vmem:[%s508_s2 + $0x8] sm:$0xff]  ;;  %v328_v15 = vld [vmem:[%s506_s0 + $0x18] sm:$0xff] }
   0x5   :  { %196 = vperm.xlu2 %354, %v190_v10   ;;  %v329_v13 = vld [vmem:[%s506_s0 + $0x20] sm:$0xff]  ;;  %v191_v14 = vld [vmem:[%s509_s3 + $0x8] sm:$0xff]  ;;  %v323_v16 = vld [vmem:[%s507_s1 + $0x14] sm:$0xf] }
   0x6   :  { %125 = vmatpush.bf16.msra.mxu0 %v331_v4  ;;  %319 = vmatmul.msk.bf16.vlgmr.msra.gmra.mxu1 %vm117_vm0, %v274_v6  ;;  %v279_v17 = vld [vmem:[%s507_s1 + $0x18] sm:$0xf0]  ;;  %v192_v19 = vld [vmem:[%s509_s3 + $0x10] sm:$0xff]  ;;  %v326_v22 = vld [vmem:[%s506_s0 + $0x8] sm:$0xff] }
   0x7   :  { %344 = vmatpush.bf16.msra.mxu2 %v331_v4  ;;  %v193_v18 = vld [vmem:[%s509_s3 + $0x18] sm:$0xff]  ;;  %v327_v20 = vld [vmem:[%s506_s0 + $0x10] sm:$0xff]  ;;  %v282_v21 = vor.u32 %v323_v16, %v279_v17  ;;  %v325_v23 = vld [vmem:[%s506_s0] sm:$0xff] }
   0x8   :  { %v269_v24 = vld [vmem:[%s507_s1] sm:$0xf]  ;;  %v322_v25 = vld [vmem:[%s507_s1 + $0x4] sm:$0xf0]  ;;  %v277_v26 = vld [vmem:[%s507_s1 + $0x10] sm:$0xf] }
   0x9   :  { %v324_v27 = vld [vmem:[%s507_s1 + $0x14] sm:$0xf0]  ;;  %v270_v28 = vor.u32 %v322_v25, %v269_v24  ;;  %v335_v38 = vld [vmem:[%s510_s4] sm:$0xff]   ;;  %v342_v48 = vld [vmem:[%s510_s4 + $0x8] sm:$0xff]  }
   0xa   :  { %126 = vmatpush.bf16.msra.mxu0 %v330_v9  ;;  %v278_v29 = vor.u32 %v324_v27, %v277_v26  ;;  %v336_v42 = vunpack.c.l.bf16 %v335_v38  ;;  %v340_v58 = vunpack.c.l.bf16 %v342_v48  ;;  %v337_v63 = vunpack.c.h.bf16 %v335_v38 }
   0xb   :  { %345 = vmatpush.bf16.msra.mxu2 %v330_v9 }
   0xc   :  { %183 = vperm.xlu1 %353, %v165_v11   ;;  %173 = vperm.xlu0 %352, %v163_v12  }
   0xd   :  { %201 = vperm.xlu2 %354, %v191_v14   ;;  %v341_v14 = vunpack.c.h.bf16 %v342_v48 }
   0xe   :  { %127 = vmatpush.bf16.msra.mxu0 %v329_v13 }
   0xf   :  { %346 = vmatpush.bf16.msra.mxu2 %v329_v13 }
  0x12   :  { %128 = vmatpush.bf16.msra.mxu0 %v328_v15 }
  0x13   :  { %347 = vmatpush.bf16.msra.mxu2 %v328_v15 }
  0x14   :  { %211 = vperm.xlu1 %353, %v193_v18   ;;  %206 = vperm.xlu0 %352, %v192_v19  }
  0x16   :  { %129 = vmatpush.bf16.msra.mxu0 %v327_v20  ;;  %320 = vmatmul.msk.bf16.gmra.mxu1 %vm117_vm0, %v282_v21 }
  0x17   :  { %348 = vmatpush.bf16.msra.mxu2 %v327_v20 }
  0x1a   :  { %130 = vmatpush.bf16.msra.mxu0 %v326_v22 }
  0x1b   :  { %349 = vmatpush.bf16.msra.mxu2 %v326_v22 }
  0x1e   :  { %131 = vmatpush.bf16.msra.mxu0 %v325_v23 }
  0x1f   :  { %350 = vmatpush.bf16.msra.mxu2 %v325_v23 }
  0x21   :  { %132 = vmatmul.bf16.vlgmr.msra.gmra.mxu0 %v270_v28 }
  0x22   :  { %137 = vmatmul.bf16.vlgmr.msra.gmra.mxu2 %v278_v29 }
  0x5f   :  { %v197_v37 = vpop.permute.xlu2 %196 }
  0x67   :  { %v202_v59 = vpop.permute.xlu2 %201 }
  0x76   :  { %v169_v31 = vpop.permute.xlu0 %168  ;;  %v179_v33 = vpop.permute.xlu1 %178 }
  0x7e   :  { %v174_v34 = vpop.permute.xlu0 %173  ;;  %v184_v46 = vpop.permute.xlu1 %183 }
  0x83   :  { %v152_v30 = vpop.f32.mrf.mxu1 }
  0x86   :  { %v207_v54 = vpop.permute.xlu0 %206  ;;  %v212_v8 = vpop.permute.xlu1 %211 }
  0x8b   :  { %v154_v32 = vpop.f32.mrf.mxu1 }
  0x93   :  { %v157_v40 = vpop.f32.mrf.mxu1 }
  0x9b   :  { %v159_v62 = vpop.f32.mrf.mxu1 }
  0x9e   :  { %v133_v35 = vpop.f32.mrf.mxu0 }
  0x9f   :  { %v153_v36 = vadd.f32 %v152_v30, %v133_v35 }
  0xa1   :  { %v186_v39 = vmul.f32 %v169_v31, %v153_v36 }
  0xa3   :  { %v214_v41 = vadd.f32 %v197_v37, %v186_v39 }
  0xa5   :  { %v138_v43 = vpop.f32.mrf.mxu2  ;;  %vm218_vm1 = vcmp.gt.f32.partialorder %v214_v41, 0.0  ;;  %v222_v44 = vmul.f32 0.1, %v214_v41 }
  0xa6   :  { %v158_v45 = vadd.f32 %v157_v40, %v138_v43  ;;  %v135_v47 = vpop.f32.mrf.mxu0 }
  0xa7   :  { %v226_v49 = vsel %vm218_vm1, %v214_v41, %v222_v44  ;;  %v155_v51 = vadd.f32 %v154_v32, %v135_v47 }
  0xa8   :  { %v188_v50 = vmul.f32 %v179_v33, %v158_v45  ;;  %v230_v52 = vpack.c.bf16 %v226_v49, %v226_v49  ;;  %v247_v53 = vadd.f32 %v336_v42, %v226_v49 }
  0xa9   :  { %v187_v56 = vmul.f32 %v174_v34, %v155_v51 }
  0xaa   :  { %v216_v55 = vadd.f32 %v207_v54, %v188_v50  ;;  %235 = vst.msk [vmem:[%s511_s5] sm:$0xf] %vm234_vm2, %v230_v52  ;;  %v251_v57 = vpack.c.bf16 %v247_v53, %v247_v53 }
  0xab   :  { %v215_v61 = vadd.f32 %v202_v59, %v187_v56 }
  0xac   :  { %vm220_vm3 = vcmp.gt.f32.partialorder %v216_v55, 0.0  ;;  %v224_v60 = vmul.f32 0.1, %v216_v55  ;;  %255 = vst.msk [vmem:[%s512_s6] sm:$0xf] %vm234_vm2, %v251_v57 }
  0xad   :  { %v140_v0 = vpop.f32.mrf.mxu2  ;;  %vm219_vm4 = vcmp.gt.f32.partialorder %v215_v61, 0.0  ;;  %v223_v2 = vmul.f32 0.1, %v215_v61 }
  0xae   :  { %v228_v1 = vsel %vm220_vm3, %v216_v55, %v224_v60  ;;  %v160_v3 = vadd.f32 %v159_v62, %v140_v0 }
  0xaf   :  { %v232_v4 = vpack.c.bf16 %v228_v1, %v228_v1  ;;  %v249_v5 = vadd.f32 %v340_v58, %v228_v1  ;;  %v227_v6 = vsel %vm219_vm4, %v215_v61, %v223_v2 }
  0xb0   :  { %v189_v7 = vmul.f32 %v184_v46, %v160_v3  ;;  %v231_v10 = vpack.c.bf16 %v227_v6, %v227_v6  ;;  %v248_v11 = vadd.f32 %v337_v63, %v227_v6 }
  0xb1   :  { %237 = vst.msk [vmem:[%s511_s5 + $0x8] sm:$0xf] %vm234_vm2, %v232_v4  ;;  %v253_v9 = vpack.c.bf16 %v249_v5, %v249_v5 }
  0xb2   :  { %v217_v12 = vadd.f32 %v212_v8, %v189_v7  ;;  %v252_v13 = vpack.c.bf16 %v248_v11, %v248_v11  ;;  %236 = vst.msk [vmem:[%s511_s5 + $0x4] sm:$0xf] %vm234_vm2, %v231_v10 }
  0xb3   :  { %257 = vst.msk [vmem:[%s512_s6 + $0x8] sm:$0xf] %vm234_vm2, %v253_v9 }
  0xb4   :  { %vm221_vm5 = vcmp.gt.f32.partialorder %v217_v12, 0.0  ;;  %v225_v15 = vmul.f32 0.1, %v217_v12  ;;  %256 = vst.msk [vmem:[%s512_s6 + $0x4] sm:$0xf] %vm234_vm2, %v252_v13 }
  0xb6   :  { %v229_v16 = vsel %vm221_vm5, %v217_v12, %v225_v15 }
  0xb7   :  { %v233_v17 = vpack.c.bf16 %v229_v16, %v229_v16  ;;  %v250_v18 = vadd.f32 %v341_v14, %v229_v16 }
  0xb9   :  { %238 = vst.msk [vmem:[%s511_s5 + $0xc] sm:$0xf] %vm234_vm2, %v233_v17  ;;  %v254_v19 = vpack.c.bf16 %v250_v18, %v250_v18 }
  0xbb   :  { %258 = vst.msk [vmem:[%s512_s6 + $0xc] sm:$0xf] %vm234_vm2, %v254_v19 }

// kernel: _lambda_.23
= control target key start
LH: loop header
LB: loop body
LE: loop exit
PB: predicated region body
PF: predicated region fallthrough
CT: control target
= control target key end

     0   :  { %v347_v0 = vmov 0   ;;  %vm63_vm0 = vcmask 261120   ;;  %s511_s2 = inlined_call_operand.vmem [shape: f32[24,1], index: 2, kind: input, shape index: {}]   ;;  %s512_s0 = inlined_call_operand.vmem [shape: bf16[32,128], index: 0, kind: input, shape index: {}]   ;;  %s513_s3 = inlined_call_operand.vmem [shape: f32[24,1], index: 3, kind: input, shape index: {}]   ;;  %s514_s1 = inlined_call_operand.vmem [shape: bf16[24,32], index: 1, kind: input, shape index: {}]   ;;  %s515_s8 = inlined_call_operand.vmem [shape: f32[1,128], index: 8, kind: input, shape index: {}]   ;;  %s516_s9 = inlined_call_operand.vmem [shape: f32[1,128], index: 9, kind: input, shape index: {}]   ;;  %s517_s4 = inlined_call_operand.vmem [shape: f32[24,1], index: 4, kind: input, shape index: {}]   ;;  %s518_s5 = inlined_call_operand.vmem [shape: f32[24,1], index: 5, kind: input, shape index: {}]   ;;  %s519_s6 = inlined_call_operand.vmem [shape: f32[24,1], index: 6, kind: input, shape index: {}]   ;;  %s520_s7 = inlined_call_operand.vmem [shape: f32[24,1], index: 7, kind: input, shape index: {}]   ;;  %s521_s10 = inlined_call_operand.vmem [shape: f32[24,128], index: 10, kind: output, shape index: {}]  }
   0x1   :  { %325 = vset.pattern.permute.xlu1 %v347_v0  ;;  %324 = vset.pattern.permute.xlu0 %v347_v0  ;;  %v90_v1 = vld [vmem:[%s511_s2 + $0x10] sm:$0xff]  ;;  %v88_v2 = vld [vmem:[%s511_s2] sm:$0xff]  ;;  %v320_v3 = vld [vmem:[%s512_s0 + $0x8] sm:$0xff] }
   0x2   :  { %103 = vperm.xlu1 %325, %v90_v1   ;;  %93 = vperm.xlu0 %324, %v88_v2   ;;  %v110_v4 = vld [vmem:[%s513_s3 + $0x8] sm:$0xff]  ;;  %v319_v5 = vld [vmem:[%s512_s0] sm:$0xff]  ;;  %v111_v12 = vld [vmem:[%s513_s3 + $0x10] sm:$0xff] }
   0x3   :  { %76 = vmatpush.bf16.msra.mxu0 %v320_v3  ;;  %321 = vmatpush.bf16.msra.mxu1 %v320_v3  ;;  %v38_v6 = vld [vmem:[%s514_s1 + $0x8] sm:$0xf]  ;;  %v109_v8 = vld [vmem:[%s513_s3] sm:$0xff]  ;;  %v132_v15 = vld [vmem:[%s517_s4 + $0x10] sm:$0xff] }
   0x4   :  { %326 = vset.pattern.permute.xlu2 %v347_v0  ;;  %v48_v7 = vunpack.c.l.b16 %v38_v6  ;;  %v89_v9 = vld [vmem:[%s511_s2 + $0x8] sm:$0xff]  ;;  %v318_v10 = vld [vmem:[%s514_s1] sm:$0xff]  ;;  %v135_v18 = vld [vmem:[%s518_s5 + $0x10] sm:$0xff] }
   0x5   :  { %119 = vperm.xlu2 %326, %v110_v4   ;;  %v131_v13 = vld [vmem:[%s517_s4 + $0x8] sm:$0xff]  ;;  %v130_v14 = vld [vmem:[%s517_s4] sm:$0xff]  ;;  %v138_v21 = vld [vmem:[%s519_s6 + $0x10] sm:$0xff] }
   0x6   :  { %v50_v11 = vpack.c.b16 %v48_v7, %v48_v7  ;;  %v134_v16 = vld [vmem:[%s518_s5 + $0x8] sm:$0xff]  ;;  %v133_v17 = vld [vmem:[%s518_s5] sm:$0xff]  ;;  %v141_v24 = vld [vmem:[%s520_s7 + $0x10] sm:$0xff] }
   0x7   :  { %77 = vmatpush.bf16.msra.mxu0 %v319_v5  ;;  %322 = vmatpush.bf16.msra.mxu1 %v319_v5  ;;  %v137_v19 = vld [vmem:[%s519_s6 + $0x8] sm:$0xff]  ;;  %v136_v20 = vld [vmem:[%s519_s6] sm:$0xff] }
   0x8   :  { %v140_v22 = vld [vmem:[%s520_s7 + $0x8] sm:$0xff]  ;;  %v139_v23 = vld [vmem:[%s520_s7] sm:$0xff] }
   0x9   :  { %v480_v58 = vld [vmem:[%s515_s8] ss:$0 sm:$0xff] }
   0xa   :  { %114 = vperm.xlu1 %325, %v109_v8   ;;  %98 = vperm.xlu0 %324, %v89_v9   ;;  %v328_v59 = vld [vmem:[%s516_s9] ss:$0 sm:$0xff] }
   0xb   :  { %316 = vmatmul.msk.bf16.vlgmr.msra.gmra.mxu0 %vm63_vm0, %v318_v10  ;;  %317 = vmatmul.msk.bf16.vlgmr.msra.gmra.mxu1 %vm63_vm0, %v50_v11 }
   0xd   :  { %124 = vperm.xlu2 %326, %v111_v12  }
  0x12   :  { %151 = vperm.xlu1 %325, %v131_v13   ;;  %146 = vperm.xlu0 %324, %v130_v14  }
  0x15   :  { %156 = vperm.xlu2 %326, %v132_v15  }
  0x1a   :  { %166 = vperm.xlu1 %325, %v134_v16   ;;  %161 = vperm.xlu0 %324, %v133_v17  }
  0x1d   :  { %171 = vperm.xlu2 %326, %v135_v18  }
  0x22   :  { %181 = vperm.xlu1 %325, %v137_v19   ;;  %176 = vperm.xlu0 %324, %v136_v20  }
  0x25   :  { %186 = vperm.xlu2 %326, %v138_v21  }
  0x2a   :  { %196 = vperm.xlu1 %325, %v140_v22   ;;  %191 = vperm.xlu0 %324, %v139_v23  }
  0x2d   :  { %201 = vperm.xlu2 %326, %v141_v24  }
  0x5f   :  { %v120_v25 = vpop.permute.xlu2 %119 }
  0x67   :  { %v125_v28 = vpop.permute.xlu2 %124 }
  0x6f   :  { %v469_v37 = vpop.permute.xlu2 %156 }
  0x74   :  { %v94_v26 = vpop.permute.xlu0 %93  ;;  %v104_v27 = vpop.permute.xlu1 %103 }
  0x77   :  { %v172_v50 = vpop.permute.xlu2 %171 }
  0x78   :  { %v212_v5 = vmul.f32 %v480_v58, %v172_v50 }
  0x7c   :  { %v99_v29 = vpop.permute.xlu0 %98  ;;  %v115_v34 = vpop.permute.xlu1 %114 }
  0x7f   :  { %v187_v1 = vpop.permute.xlu2 %186 }
  0x80   :  { %v215_v6 = vmul.f32 %v328_v59, %v187_v1 }
  0x84   :  { %v471_v38 = vpop.permute.xlu0 %146  ;;  %v473_v47 = vpop.permute.xlu1 %151 }
  0x88   :  { %v79_v30 = vpop.f32.mrf.mxu0  ;;  %v84_v31 = vpop.f32.mrf.mxu1 }
  0x89   :  { %v106_v32 = vmul.f32 %v94_v26, %v79_v30  ;;  %v108_v33 = vmul.f32 %v104_v27, %v84_v31 }
  0x8b   :  { %v127_v35 = vadd.f32 %v115_v34, %v106_v32  ;;  %v129_v36 = vadd.f32 %v125_v28, %v108_v33  ;;  %v202_v32 = vpop.permute.xlu2 %201 }
  0x8c   :  { %v162_v51 = vpop.permute.xlu0 %161  ;;  %v475_v56 = vpop.permute.xlu1 %166  ;;  %vm293_vm10 = vcmp.gt.f32.partialorder %v202_v32, 0.5 }
  0x8d   :  { %v219_v39 = vsub.f32 0.0, %v127_v35  ;;  %v221_v40 = vsub.f32 0.0, %v129_v36  ;;  %v282_v60 = vmul.f32 1.442695, %v127_v35  ;;  %v286_v62 = vmul.f32 1.442695, %v129_v36 }
  0x8e   :  { %v210_v16 = vmul.f32 %v480_v58, %v162_v51 }
  0x8f   :  { %v222_v41 = vmul.f32 1.442695, %v219_v39  ;;  %v226_v42 = vmul.f32 1.442695, %v221_v40 }
  0x90   :  { %v81_v43 = vpop.f32.mrf.mxu0  ;;  %v86_v44 = vpop.f32.mrf.mxu1 }
  0x91   :  { %329 = vpow2.f32 %v222_v41  ;;  %v107_v45 = vmul.f32 %v99_v29, %v81_v43  ;;  %v218_v29 = vadd.f32 %v215_v6, %v212_v5 }
  0x92   :  { %331 = vpow2.f32 %v226_v42 }
  0x93   :  { %v128_v46 = vadd.f32 %v120_v25, %v107_v45 }
  0x94   :  { %v177_v2 = vpop.permute.xlu0 %176  ;;  %v182_v21 = vpop.permute.xlu1 %181 }
  0x95   :  { %v220_v48 = vsub.f32 0.0, %v128_v46  ;;  %v213_v9 = vmul.f32 %v328_v59, %v177_v2  ;;  %v284_v17 = vmul.f32 1.442695, %v128_v46  ;;  %v214_v34 = vmul.f32 %v328_v59, %v182_v21 }
  0x97   :  { %v330_v49 = vpop.eup %329  ;;  %v224_v52 = vmul.f32 1.442695, %v220_v48  ;;  %v216_v22 = vadd.f32 %v213_v9, %v210_v16 }
  0x98   :  { %v332_v53 = vpop.eup %331  ;;  %v228_v54 = vadd.f32 1.0, %v330_v49  ;;  %v211_v49 = vmul.f32 %v480_v58, %v475_v56 }
  0x99   :  { %v230_v55 = vadd.f32 1.0, %v332_v53  ;;  %333 = vpow2.f32 %v224_v52 }
  0x9a   :  { %335 = vrcp.f32 %v228_v54  ;;  %v242_v10 = vand.u32 2147483648, %v228_v54  ;;  %v240_v13 = vand.u32 2147483647, %v228_v54  ;;  %vm236_vm3 = vweird.f32 %v228_v54 }
  0x9b   :  { %337 = vrcp.f32 %v230_v55  ;;  %v272_v11 = vand.u32 2147483648, %v230_v55  ;;  %v270_v15 = vand.u32 2147483647, %v230_v55  ;;  %vm266_vm4 = vweird.f32 %v230_v55 }
  0x9c   :  { %v243_v23 = vor.u32 1.1754944e-38, %v242_v10  ;;  %vm241_vm7 = vcmp.eq.f32.partialorder %v240_v13, 8.507059e+37  ;;  %v192_v39 = vpop.permute.xlu0 %191 }
  0x9d   :  { %v273_v25 = vor.u32 1.1754944e-38, %v272_v11  ;;  %vm271_vm8 = vcmp.eq.f32.partialorder %v270_v15, 8.507059e+37  ;;  %vm291_vm11 = vcmp.gt.f32.partialorder %v192_v39, 0.5 }
  0x9f   :  { %v334_v57 = vpop.eup %333 }
  0xa0   :  { %v336_v61 = vpop.eup %335  ;;  %v485_v63 = vadd.f32 1.0, %v334_v57  ;;  %v197_v57 = vpop.permute.xlu1 %196 }
  0xa1   :  { %v338_v0 = vpop.eup %337  ;;  %v232_v3 = vmul.f32 %v336_v61, %v228_v54  ;;  %vm237_vm1 = vweird.f32 %v336_v61  ;;  %vm292_vm15 = vcmp.gt.f32.partialorder %v197_v57, 0.5 }
  0xa2   :  { %v262_v4 = vmul.f32 %v338_v0, %v230_v55  ;;  %339 = vrcp.f32 %v485_v63  ;;  %vm267_vm2 = vweird.f32 %v338_v0  ;;  %vm238_vm5 = vmor %vm236_vm3, %vm237_vm1  ;;  %v257_v41 = vand.u32 2147483648, %v485_v63 }
  0xa3   :  { %341 = vpow2.f32 %v282_v60  ;;  %v233_v7 = vsub.f32 1.0, %v232_v3  ;;  %vm268_vm6 = vmor %vm266_vm4, %vm267_vm2  ;;  %v255_v44 = vand.u32 2147483647, %v485_v63  ;;  %vm251_vm12 = vweird.f32 %v485_v63 }
  0xa4   :  { %343 = vpow2.f32 %v286_v62  ;;  %v263_v8 = vsub.f32 1.0, %v262_v4  ;;  %v258_v53 = vor.u32 1.1754944e-38, %v257_v41 }
  0xa5   :  { %v234_v12 = vmul.f32 %v336_v61, %v233_v7  ;;  %345 = vpow2.f32 %v284_v17  ;;  %vm256_vm14 = vcmp.eq.f32.partialorder %v255_v44, 8.507059e+37 }
  0xa6   :  { %v264_v14 = vmul.f32 %v338_v0, %v263_v8 }
  0xa7   :  { %v235_v18 = vadd.f32 %v336_v61, %v234_v12 }
  0xa8   :  { %v340_v19 = vpop.eup %339  ;;  %v265_v20 = vadd.f32 %v338_v0, %v264_v14 }
  0xa9   :  { %v342_v24 = vpop.eup %341  ;;  %v247_v26 = vmul.f32 %v340_v19, %v485_v63  ;;  %v239_v27 = vsel %vm238_vm5, %v336_v61, %v235_v18  ;;  %vm252_vm9 = vweird.f32 %v340_v19 }
  0xaa   :  { %v344_v28 = vpop.eup %343  ;;  %v269_v30 = vsel %vm268_vm6, %v338_v0, %v265_v20  ;;  %v244_v31 = vsel %vm241_vm7, %v243_v23, %v239_v27  ;;  %v288_v42 = vmul.f32 %v342_v24, %v471_v38  ;;  %vm253_vm13 = vmor %vm251_vm12, %vm252_vm9 }
  0xab   :  { %v274_v33 = vsel %vm271_vm8, %v273_v25, %v269_v30  ;;  %v248_v35 = vsub.f32 1.0, %v247_v26  ;;  %v276_v36 = vadd.f32 %v244_v31, %v216_v22  ;;  %v290_v48 = vmul.f32 %v344_v28, %v469_v37  ;;  %v346_v54 = vpop.eup %345 }
  0xac   :  { %v278_v40 = vadd.f32 %v274_v33, %v218_v29  ;;  %v289_v59 = vmul.f32 %v346_v54, %v473_v47 }
  0xad   :  { %v249_v43 = vmul.f32 %v340_v19, %v248_v35  ;;  %v279_v45 = vmul.f32 %v276_v36, %v471_v38 }
  0xae   :  { %v281_v46 = vmul.f32 %v278_v40, %v469_v37  ;;  %v217_v37 = vadd.f32 %v214_v34, %v211_v49 }
  0xaf   :  { %v250_v50 = vadd.f32 %v340_v19, %v249_v43  ;;  %v294_v51 = vsel %vm291_vm11, %v288_v42, %v279_v45 }
  0xb0   :  { %v296_v52 = vsel %vm293_vm10, %v290_v48, %v281_v46  ;;  %297 = vst [vmem:[%s521_s10] sm:$0xff] %v294_v51 }
  0xb1   :  { %299 = vst [vmem:[%s521_s10 + $0x10] sm:$0xff] %v296_v52  ;;  %v254_v38 = vsel %vm253_vm13, %v340_v19, %v250_v50 }
  0xb2   :  { %v259_v55 = vsel %vm256_vm14, %v258_v53, %v254_v38 }
  0xb3   :  { %v277_v56 = vadd.f32 %v259_v55, %v217_v37 }
  0xb5   :  { %v280_v58 = vmul.f32 %v277_v56, %v473_v47 }
  0xb7   :  { %v295_v60 = vsel %vm292_vm15, %v289_v59, %v280_v58 }
  0xb8   :  { %298 = vst [vmem:[%s521_s10 + $0x8] sm:$0xff] %v295_v60 }

// kernel: _lambda_.22
= control target key start
LH: loop header
LB: loop body
LE: loop exit
PB: predicated region body
PF: predicated region fallthrough
CT: control target
= control target key end

     0   :  { %v489_v5 = vmov 0   ;;  %vm200_vm0 = vcmask 261120   ;;  %s637_s0 = inlined_call_operand.vmem [shape: bf16[288,128], index: 0, kind: input, shape index: {}]   ;;  %s638_s1 = inlined_call_operand.vmem [shape: bf16[32,288], index: 1, kind: input, shape index: {}]   ;;  %s639_s2 = inlined_call_operand.vmem [shape: f32[32,1], index: 2, kind: input, shape index: {}]   ;;  %s640_s3 = inlined_call_operand.vmem [shape: f32[32,1], index: 3, kind: input, shape index: {}]   ;;  %s641_s4 = inlined_call_operand.vmem [shape: bf16[32,128], index: 4, kind: output, shape index: {}]  }
   0x1   :  { %v455_v0 = vld [vmem:[%s637_s0 + $0x38] sm:$0xff]  ;;  %v454_v2 = vld [vmem:[%s637_s0 + $0x30] sm:$0xff]  ;;  %v465_v4 = vld [vmem:[%s637_s0 + $0x88] sm:$0xff]  ;;  %487 = vset.pattern.permute.xlu1 %v489_v5  ;;  %486 = vset.pattern.permute.xlu0 %v489_v5 }
   0x2   :  { %v463_v1 = vld [vmem:[%s637_s0 + $0x78] sm:$0xff]  ;;  %207 = vmatpush.bf16.msra.mxu0 %v455_v0  ;;  %v462_v3 = vld [vmem:[%s637_s0 + $0x70] sm:$0xff]  ;;  %477 = vmatpush.bf16.msra.mxu3 %v455_v0  ;;  %v464_v6 = vld [vmem:[%s637_s0 + $0x80] sm:$0xff] }
   0x3   :  { %226 = vmatpush.bf16.msra.mxu1 %v463_v1  ;;  %251 = vmatpush.bf16.msra.mxu2 %v465_v4  ;;  %v354_v7 = vld [vmem:[%s638_s1 + $0x8] sm:$0xf]  ;;  %v444_v8 = vld [vmem:[%s638_s1 + $0x10] sm:$0xf0]  ;;  %v264_v13 = vld [vmem:[%s639_s2] sm:$0xff] }
   0x4   :  { %488 = vset.pattern.permute.xlu2 %v489_v5  ;;  %v453_v9 = vld [vmem:[%s637_s0 + $0x28] sm:$0xff]  ;;  %v355_v11 = vor.u32 %v444_v8, %v354_v7  ;;  %v266_v12 = vld [vmem:[%s639_s2 + $0x10] sm:$0xff]  ;;  %v452_v14 = vld [vmem:[%s637_s0 + $0x20] sm:$0xff]  ;;  %270 = vperm.xlu0 %486, %v264_v13  }
   0x5   :  { %v461_v10 = vld [vmem:[%s637_s0 + $0x68] sm:$0xff]  ;;  %v460_v15 = vld [vmem:[%s637_s0 + $0x60] sm:$0xff]  ;;  %280 = vperm.xlu1 %487, %v266_v12   ;;  %v451_v16 = vld [vmem:[%s637_s0 + $0x18] sm:$0xff] }
   0x6   :  { %208 = vmatpush.bf16.msra.mxu0 %v454_v2  ;;  %478 = vmatpush.bf16.msra.mxu3 %v454_v2  ;;  %v459_v17 = vld [vmem:[%s637_s0 + $0x58] sm:$0xff]  ;;  %v265_v19 = vld [vmem:[%s639_s2 + $0x8] sm:$0xff]  ;;  %v450_v20 = vld [vmem:[%s637_s0 + $0x10] sm:$0xff] }
   0x7   :  { %227 = vmatpush.bf16.msra.mxu1 %v462_v3  ;;  %252 = vmatpush.bf16.msra.mxu2 %v464_v6  ;;  %v267_v18 = vld [vmem:[%s639_s2 + $0x18] sm:$0xff]  ;;  %v458_v21 = vld [vmem:[%s637_s0 + $0x50] sm:$0xff]  ;;  %v292_v22 = vld [vmem:[%s640_s3] sm:$0xff] }
   0x8   :  { %298 = vperm.xlu2 %488, %v292_v22   ;;  %v366_v23 = vld [vmem:[%s638_s1 + $0x20] sm:$0xf]  ;;  %v447_v24 = vld [vmem:[%s638_s1 + $0x28] sm:$0xf0]  ;;  %v295_v32 = vld [vmem:[%s640_s3 + $0x18] sm:$0xff] }
   0x9   :  { %v449_v25 = vld [vmem:[%s637_s0 + $0x8] sm:$0xff]  ;;  %v367_v27 = vor.u32 %v447_v24, %v366_v23  ;;  %v448_v28 = vld [vmem:[%s637_s0] sm:$0xff]  ;;  %v294_v33 = vld [vmem:[%s640_s3 + $0x10] sm:$0xff] }
   0xa   :  { %209 = vmatpush.bf16.msra.mxu0 %v453_v9  ;;  %479 = vmatpush.bf16.msra.mxu3 %v453_v9  ;;  %v457_v26 = vld [vmem:[%s637_s0 + $0x48] sm:$0xff]  ;;  %v456_v29 = vld [vmem:[%s637_s0 + $0x40] sm:$0xff]  ;;  %v348_v35 = vld [vmem:[%s638_s1 + $0xc] sm:$0xf0] }
   0xb   :  { %228 = vmatpush.bf16.msra.mxu1 %v461_v10  ;;  %440 = vmatmul.msk.bf16.vlgmr.msra.gmra.mxu2 %vm200_vm0, %v355_v11  ;;  %v346_v30 = vld [vmem:[%s638_s1] sm:$0xf]  ;;  %v443_v31 = vld [vmem:[%s638_s1 + $0x8] sm:$0xf0]  ;;  %v442_v34 = vld [vmem:[%s638_s1 + $0x4] sm:$0xf] }
   0xc   :  { %275 = vperm.xlu0 %486, %v265_v19   ;;  %v293_v36 = vld [vmem:[%s640_s3 + $0x8] sm:$0xff]  ;;  %v358_v37 = vld [vmem:[%s638_s1 + $0x18] sm:$0xf]  ;;  %v446_v38 = vld [vmem:[%s638_s1 + $0x20] sm:$0xf0]  ;;  %v347_v39 = vor.u32 %v443_v31, %v346_v30  ;;  %v351_v40 = vor.u32 %v442_v34, %v348_v35 }
   0xd   :  { %285 = vperm.xlu1 %487, %v267_v18   ;;  %v359_v41 = vor.u32 %v446_v38, %v358_v37  ;;  %v445_v42 = vld [vmem:[%s638_s1 + $0x1c] sm:$0xf]  ;;  %v360_v43 = vld [vmem:[%s638_s1 + $0x24] sm:$0xf0] }
   0xe   :  { %210 = vmatpush.bf16.msra.mxu0 %v452_v14  ;;  %480 = vmatpush.bf16.msra.mxu3 %v452_v14  ;;  %v363_v44 = vor.u32 %v445_v42, %v360_v43 }
   0xf   :  { %229 = vmatpush.bf16.msra.mxu1 %v460_v15 }
  0x10   :  { %303 = vperm.xlu2 %488, %v293_v36  }
  0x12   :  { %211 = vmatpush.bf16.msra.mxu0 %v451_v16  ;;  %481 = vmatpush.bf16.msra.mxu3 %v451_v16 }
  0x13   :  { %230 = vmatpush.bf16.msra.mxu1 %v459_v17 }
  0x14   :  { %308 = vperm.xlu0 %486, %v294_v33  }
  0x15   :  { %313 = vperm.xlu1 %487, %v295_v32  }
  0x16   :  { %212 = vmatpush.bf16.msra.mxu0 %v450_v20  ;;  %482 = vmatpush.bf16.msra.mxu3 %v450_v20 }
  0x17   :  { %231 = vmatpush.bf16.msra.mxu1 %v458_v21 }
  0x1a   :  { %213 = vmatpush.bf16.msra.mxu0 %v449_v25  ;;  %483 = vmatpush.bf16.msra.mxu3 %v449_v25 }
  0x1b   :  { %232 = vmatpush.bf16.msra.mxu1 %v457_v26  ;;  %441 = vmatmul.msk.bf16.gmra.mxu2 %vm200_vm0, %v367_v27 }
  0x1e   :  { %214 = vmatpush.bf16.msra.mxu0 %v448_v28  ;;  %484 = vmatpush.bf16.msra.mxu3 %v448_v28 }
  0x1f   :  { %233 = vmatpush.bf16.msra.mxu1 %v456_v29 }
  0x21   :  { %215 = vmatmul.bf16.vlgmr.msra.gmra.mxu0 %v347_v39  ;;  %220 = vmatmul.bf16.vlgmr.msra.gmra.mxu3 %v359_v41 }
  0x22   :  { %234 = vmatmul.bf16.vlgmr.msra.gmra.mxu1 %v351_v40 }
  0x32   :  { %239 = vmatmul.bf16.gmra.mxu1 %v363_v44 }
  0x62   :  { %v299_v50 = vpop.permute.xlu2 %298 }
  0x6a   :  { %v304_v61 = vpop.permute.xlu2 %303 }
  0x76   :  { %v271_v49 = vpop.permute.xlu0 %270 }
  0x77   :  { %v281_v57 = vpop.permute.xlu1 %280 }
  0x7e   :  { %v276_v60 = vpop.permute.xlu0 %275 }
  0x7f   :  { %v286_v9 = vpop.permute.xlu1 %285 }
  0x86   :  { %v309_v15 = vpop.permute.xlu0 %308 }
  0x87   :  { %v314_v20 = vpop.permute.xlu1 %313 }
  0x8e   :  { %v254_v45 = vpop.f32.mrf.mxu2 }
  0x96   :  { %v256_v52 = vpop.f32.mrf.mxu2 }
  0x9e   :  { %v216_v46 = vpop.f32.mrf.mxu0  ;;  %v259_v2 = vpop.f32.mrf.mxu2 }
  0x9f   :  { %v235_v47 = vpop.f32.mrf.mxu1 }
  0xa0   :  { %v236_v48 = vadd.f32 %v235_v47, %v216_v46 }
  0xa2   :  { %v255_v51 = vadd.f32 %v254_v45, %v236_v48 }
  0xa4   :  { %v288_v53 = vmul.f32 %v271_v49, %v255_v51  ;;  %v221_v63 = vpop.f32.mrf.mxu3 }
  0xa6   :  { %v218_v54 = vpop.f32.mrf.mxu0  ;;  %v316_v58 = vadd.f32 %v299_v50, %v288_v53  ;;  %v261_v16 = vpop.f32.mrf.mxu2 }
  0xa7   :  { %v237_v55 = vpop.f32.mrf.mxu1 }
  0xa8   :  { %v238_v56 = vadd.f32 %v237_v55, %v218_v54  ;;  %v324_v0 = vmul.f32 0.1, %v316_v58  ;;  %vm320_vm1 = vcmp.gt.f32.partialorder %v316_v58, 0.0 }
  0xaa   :  { %v257_v59 = vadd.f32 %v256_v52, %v238_v56  ;;  %v328_v6 = vsel %vm320_vm1, %v316_v58, %v324_v0 }
  0xac   :  { %v289_v62 = vmul.f32 %v276_v60, %v257_v59  ;;  %v223_v12 = vpop.f32.mrf.mxu3 }
  0xae   :  { %v317_v1 = vadd.f32 %v304_v61, %v289_v62 }
  0xaf   :  { %v240_v3 = vpop.f32.mrf.mxu1 }
  0xb0   :  { %vm321_vm2 = vcmp.gt.f32.partialorder %v317_v1, 0.0  ;;  %v325_v4 = vmul.f32 0.1, %v317_v1  ;;  %v241_v5 = vadd.f32 %v240_v3, %v221_v63 }
  0xb2   :  { %v329_v7 = vsel %vm321_vm2, %v317_v1, %v325_v4  ;;  %v260_v8 = vadd.f32 %v259_v2, %v241_v5 }
  0xb3   :  { %v469_v10 = vpack.c.bf16 %v329_v7, %v328_v6 }
  0xb4   :  { %v290_v11 = vmul.f32 %v281_v57, %v260_v8 }
  0xb5   :  { %470 = vst [vmem:[%s641_s4] sm:$0xff] %v469_v10  }
  0xb6   :  { %v318_v17 = vadd.f32 %v309_v15, %v290_v11 }
  0xb7   :  { %v242_v13 = vpop.f32.mrf.mxu1 }
  0xb8   :  { %v243_v14 = vadd.f32 %v242_v13, %v223_v12  ;;  %v326_v21 = vmul.f32 0.1, %v318_v17  ;;  %vm322_vm3 = vcmp.gt.f32.partialorder %v318_v17, 0.0 }
  0xba   :  { %v262_v18 = vadd.f32 %v261_v16, %v243_v14  ;;  %v330_v24 = vsel %vm322_vm3, %v318_v17, %v326_v21 }
  0xbc   :  { %v291_v19 = vmul.f32 %v286_v9, %v262_v18 }
  0xbe   :  { %v319_v22 = vadd.f32 %v314_v20, %v291_v19 }
  0xc0   :  { %vm323_vm4 = vcmp.gt.f32.partialorder %v319_v22, 0.0  ;;  %v327_v23 = vmul.f32 0.1, %v319_v22 }
  0xc2   :  { %v331_v25 = vsel %vm323_vm4, %v319_v22, %v327_v23 }
  0xc3   :  { %v474_v26 = vpack.c.bf16 %v331_v25, %v330_v24 }
  0xc5   :  { %476 = vst [vmem:[%s641_s4 + $0x8] sm:$0xff] %v474_v26  }

// kernel: _lambda_.20
= control target key start
LH: loop header
LB: loop body
LE: loop exit
PB: predicated region body
PF: predicated region fallthrough
CT: control target
= control target key end

     0   :  { %v347_v0 = vmov 0   ;;  %vm63_vm0 = vcmask 261120   ;;  %s516_s2 = inlined_call_operand.vmem [shape: f32[24,1], index: 2, kind: input, shape index: {}]   ;;  %s517_s0 = inlined_call_operand.vmem [shape: bf16[32,32], index: 0, kind: input, shape index: {}]   ;;  %s518_s3 = inlined_call_operand.vmem [shape: f32[24,1], index: 3, kind: input, shape index: {}]   ;;  %s519_s1 = inlined_call_operand.vmem [shape: bf16[24,32], index: 1, kind: input, shape index: {}]   ;;  %s520_s8 = inlined_call_operand.vmem [shape: f32[1,32], index: 8, kind: input, shape index: {}]   ;;  %s521_s9 = inlined_call_operand.vmem [shape: f32[1,32], index: 9, kind: input, shape index: {}]   ;;  %s522_s4 = inlined_call_operand.vmem [shape: f32[24,1], index: 4, kind: input, shape index: {}]   ;;  %s523_s5 = inlined_call_operand.vmem [shape: f32[24,1], index: 5, kind: input, shape index: {}]   ;;  %s524_s6 = inlined_call_operand.vmem [shape: f32[24,1], index: 6, kind: input, shape index: {}]   ;;  %s525_s7 = inlined_call_operand.vmem [shape: f32[24,1], index: 7, kind: input, shape index: {}]   ;;  %s526_s10 = inlined_call_operand.vmem [shape: f32[24,32], index: 10, kind: output, shape index: {}]  }
   0x1   :  { %325 = vset.pattern.permute.xlu1 %v347_v0  ;;  %324 = vset.pattern.permute.xlu0 %v347_v0  ;;  %v90_v1 = vld [vmem:[%s516_s2 + $0x10] sm:$0xff]  ;;  %v88_v2 = vld [vmem:[%s516_s2] sm:$0xff]  ;;  %v320_v3 = vld [vmem:[%s517_s0 + $0x8] sm:$0xff] }
   0x2   :  { %103 = vperm.xlu1 %325, %v90_v1   ;;  %93 = vperm.xlu0 %324, %v88_v2   ;;  %v110_v4 = vld [vmem:[%s518_s3 + $0x8] sm:$0xff]  ;;  %v319_v5 = vld [vmem:[%s517_s0] sm:$0xff]  ;;  %v111_v12 = vld [vmem:[%s518_s3 + $0x10] sm:$0xff] }
   0x3   :  { %76 = vmatpush.bf16.msra.mxu0 %v320_v3  ;;  %321 = vmatpush.bf16.msra.mxu1 %v320_v3  ;;  %v38_v6 = vld [vmem:[%s519_s1 + $0x8] sm:$0xf]  ;;  %v109_v8 = vld [vmem:[%s518_s3] sm:$0xff]  ;;  %v132_v15 = vld [vmem:[%s522_s4 + $0x10] sm:$0xff] }
   0x4   :  { %326 = vset.pattern.permute.xlu2 %v347_v0  ;;  %v48_v7 = vunpack.c.l.b16 %v38_v6  ;;  %v89_v9 = vld [vmem:[%s516_s2 + $0x8] sm:$0xff]  ;;  %v318_v10 = vld [vmem:[%s519_s1] sm:$0xff]  ;;  %v135_v18 = vld [vmem:[%s523_s5 + $0x10] sm:$0xff] }
   0x5   :  { %119 = vperm.xlu2 %326, %v110_v4   ;;  %v131_v13 = vld [vmem:[%s522_s4 + $0x8] sm:$0xff]  ;;  %v130_v14 = vld [vmem:[%s522_s4] sm:$0xff]  ;;  %v138_v21 = vld [vmem:[%s524_s6 + $0x10] sm:$0xff] }
   0x6   :  { %v50_v11 = vpack.c.b16 %v48_v7, %v48_v7  ;;  %v134_v16 = vld [vmem:[%s523_s5 + $0x8] sm:$0xff]  ;;  %v133_v17 = vld [vmem:[%s523_s5] sm:$0xff]  ;;  %v141_v24 = vld [vmem:[%s525_s7 + $0x10] sm:$0xff] }
   0x7   :  { %77 = vmatpush.bf16.msra.mxu0 %v319_v5  ;;  %322 = vmatpush.bf16.msra.mxu1 %v319_v5  ;;  %v137_v19 = vld [vmem:[%s524_s6 + $0x8] sm:$0xff]  ;;  %v136_v20 = vld [vmem:[%s524_s6] sm:$0xff] }
   0x8   :  { %v140_v22 = vld [vmem:[%s525_s7 + $0x8] sm:$0xff]  ;;  %v139_v23 = vld [vmem:[%s525_s7] sm:$0xff] }
   0x9   :  { %v482_v58 = vld [vmem:[%s520_s8] ss:$0 sm:$0xff] }
   0xa   :  { %114 = vperm.xlu1 %325, %v109_v8   ;;  %98 = vperm.xlu0 %324, %v89_v9   ;;  %v328_v59 = vld [vmem:[%s521_s9] ss:$0 sm:$0xff] }
   0xb   :  { %316 = vmatmul.msk.bf16.vlgmr.msra.gmra.mxu0 %vm63_vm0, %v318_v10  ;;  %317 = vmatmul.msk.bf16.vlgmr.msra.gmra.mxu1 %vm63_vm0, %v50_v11 }
   0xd   :  { %124 = vperm.xlu2 %326, %v111_v12  }
  0x12   :  { %151 = vperm.xlu1 %325, %v131_v13   ;;  %146 = vperm.xlu0 %324, %v130_v14  }
  0x15   :  { %156 = vperm.xlu2 %326, %v132_v15  }
  0x1a   :  { %166 = vperm.xlu1 %325, %v134_v16   ;;  %161 = vperm.xlu0 %324, %v133_v17  }
  0x1d   :  { %171 = vperm.xlu2 %326, %v135_v18  }
  0x22   :  { %181 = vperm.xlu1 %325, %v137_v19   ;;  %176 = vperm.xlu0 %324, %v136_v20  }
  0x25   :  { %186 = vperm.xlu2 %326, %v138_v21  }
  0x2a   :  { %196 = vperm.xlu1 %325, %v140_v22   ;;  %191 = vperm.xlu0 %324, %v139_v23  }
  0x2d   :  { %201 = vperm.xlu2 %326, %v141_v24  }
  0x5f   :  { %v120_v25 = vpop.permute.xlu2 %119 }
  0x67   :  { %v125_v28 = vpop.permute.xlu2 %124 }
  0x6f   :  { %v471_v37 = vpop.permute.xlu2 %156 }
  0x74   :  { %v94_v26 = vpop.permute.xlu0 %93  ;;  %v104_v27 = vpop.permute.xlu1 %103 }
  0x77   :  { %v172_v50 = vpop.permute.xlu2 %171 }
  0x78   :  { %v212_v5 = vmul.f32 %v482_v58, %v172_v50 }
  0x7c   :  { %v99_v29 = vpop.permute.xlu0 %98  ;;  %v115_v34 = vpop.permute.xlu1 %114 }
  0x7f   :  { %v187_v1 = vpop.permute.xlu2 %186 }
  0x80   :  { %v215_v6 = vmul.f32 %v328_v59, %v187_v1 }
  0x84   :  { %v473_v38 = vpop.permute.xlu0 %146  ;;  %v475_v47 = vpop.permute.xlu1 %151 }
  0x88   :  { %v79_v30 = vpop.f32.mrf.mxu0  ;;  %v84_v31 = vpop.f32.mrf.mxu1 }
  0x89   :  { %v106_v32 = vmul.f32 %v94_v26, %v79_v30  ;;  %v108_v33 = vmul.f32 %v104_v27, %v84_v31 }
  0x8b   :  { %v127_v35 = vadd.f32 %v115_v34, %v106_v32  ;;  %v129_v36 = vadd.f32 %v125_v28, %v108_v33  ;;  %v202_v32 = vpop.permute.xlu2 %201 }
  0x8c   :  { %v162_v51 = vpop.permute.xlu0 %161  ;;  %v477_v56 = vpop.permute.xlu1 %166  ;;  %vm293_vm10 = vcmp.gt.f32.partialorder %v202_v32, 0.5 }
  0x8d   :  { %v219_v39 = vsub.f32 0.0, %v127_v35  ;;  %v221_v40 = vsub.f32 0.0, %v129_v36  ;;  %v282_v60 = vmul.f32 1.442695, %v127_v35  ;;  %v286_v62 = vmul.f32 1.442695, %v129_v36 }
  0x8e   :  { %v210_v16 = vmul.f32 %v482_v58, %v162_v51 }
  0x8f   :  { %v222_v41 = vmul.f32 1.442695, %v219_v39  ;;  %v226_v42 = vmul.f32 1.442695, %v221_v40 }
  0x90   :  { %v81_v43 = vpop.f32.mrf.mxu0  ;;  %v86_v44 = vpop.f32.mrf.mxu1 }
  0x91   :  { %329 = vpow2.f32 %v222_v41  ;;  %v107_v45 = vmul.f32 %v99_v29, %v81_v43  ;;  %v218_v29 = vadd.f32 %v215_v6, %v212_v5 }
  0x92   :  { %331 = vpow2.f32 %v226_v42 }
  0x93   :  { %v128_v46 = vadd.f32 %v120_v25, %v107_v45 }
  0x94   :  { %v177_v2 = vpop.permute.xlu0 %176  ;;  %v182_v21 = vpop.permute.xlu1 %181 }
  0x95   :  { %v220_v48 = vsub.f32 0.0, %v128_v46  ;;  %v213_v9 = vmul.f32 %v328_v59, %v177_v2  ;;  %v284_v17 = vmul.f32 1.442695, %v128_v46  ;;  %v214_v34 = vmul.f32 %v328_v59, %v182_v21 }
  0x97   :  { %v330_v49 = vpop.eup %329  ;;  %v224_v52 = vmul.f32 1.442695, %v220_v48  ;;  %v216_v22 = vadd.f32 %v213_v9, %v210_v16 }
  0x98   :  { %v332_v53 = vpop.eup %331  ;;  %v228_v54 = vadd.f32 1.0, %v330_v49  ;;  %v211_v49 = vmul.f32 %v482_v58, %v477_v56 }
  0x99   :  { %v230_v55 = vadd.f32 1.0, %v332_v53  ;;  %333 = vpow2.f32 %v224_v52 }
  0x9a   :  { %335 = vrcp.f32 %v228_v54  ;;  %v242_v10 = vand.u32 2147483648, %v228_v54  ;;  %v240_v13 = vand.u32 2147483647, %v228_v54  ;;  %vm236_vm3 = vweird.f32 %v228_v54 }
  0x9b   :  { %337 = vrcp.f32 %v230_v55  ;;  %v272_v11 = vand.u32 2147483648, %v230_v55  ;;  %v270_v15 = vand.u32 2147483647, %v230_v55  ;;  %vm266_vm4 = vweird.f32 %v230_v55 }
  0x9c   :  { %v243_v23 = vor.u32 1.1754944e-38, %v242_v10  ;;  %vm241_vm7 = vcmp.eq.f32.partialorder %v240_v13, 8.507059e+37  ;;  %v192_v39 = vpop.permute.xlu0 %191 }
  0x9d   :  { %v273_v25 = vor.u32 1.1754944e-38, %v272_v11  ;;  %vm271_vm8 = vcmp.eq.f32.partialorder %v270_v15, 8.507059e+37  ;;  %vm291_vm11 = vcmp.gt.f32.partialorder %v192_v39, 0.5 }
  0x9f   :  { %v334_v57 = vpop.eup %333 }
  0xa0   :  { %v336_v61 = vpop.eup %335  ;;  %v487_v63 = vadd.f32 1.0, %v334_v57  ;;  %v197_v57 = vpop.permute.xlu1 %196 }
  0xa1   :  { %v338_v0 = vpop.eup %337  ;;  %v232_v3 = vmul.f32 %v336_v61, %v228_v54  ;;  %vm237_vm1 = vweird.f32 %v336_v61  ;;  %vm292_vm15 = vcmp.gt.f32.partialorder %v197_v57, 0.5 }
  0xa2   :  { %v262_v4 = vmul.f32 %v338_v0, %v230_v55  ;;  %339 = vrcp.f32 %v487_v63  ;;  %vm267_vm2 = vweird.f32 %v338_v0  ;;  %vm238_vm5 = vmor %vm236_vm3, %vm237_vm1  ;;  %v257_v41 = vand.u32 2147483648, %v487_v63 }
  0xa3   :  { %341 = vpow2.f32 %v282_v60  ;;  %v233_v7 = vsub.f32 1.0, %v232_v3  ;;  %vm268_vm6 = vmor %vm266_vm4, %vm267_vm2  ;;  %v255_v44 = vand.u32 2147483647, %v487_v63  ;;  %vm251_vm12 = vweird.f32 %v487_v63 }
  0xa4   :  { %343 = vpow2.f32 %v286_v62  ;;  %v263_v8 = vsub.f32 1.0, %v262_v4  ;;  %v258_v53 = vor.u32 1.1754944e-38, %v257_v41 }
  0xa5   :  { %v234_v12 = vmul.f32 %v336_v61, %v233_v7  ;;  %345 = vpow2.f32 %v284_v17  ;;  %vm256_vm14 = vcmp.eq.f32.partialorder %v255_v44, 8.507059e+37 }
  0xa6   :  { %v264_v14 = vmul.f32 %v338_v0, %v263_v8 }
  0xa7   :  { %v235_v18 = vadd.f32 %v336_v61, %v234_v12 }
  0xa8   :  { %v340_v19 = vpop.eup %339  ;;  %v265_v20 = vadd.f32 %v338_v0, %v264_v14 }
  0xa9   :  { %v342_v24 = vpop.eup %341  ;;  %v247_v26 = vmul.f32 %v340_v19, %v487_v63  ;;  %v239_v27 = vsel %vm238_vm5, %v336_v61, %v235_v18  ;;  %vm252_vm9 = vweird.f32 %v340_v19 }
  0xaa   :  { %v344_v28 = vpop.eup %343  ;;  %v269_v30 = vsel %vm268_vm6, %v338_v0, %v265_v20  ;;  %v244_v31 = vsel %vm241_vm7, %v243_v23, %v239_v27  ;;  %v288_v42 = vmul.f32 %v342_v24, %v473_v38  ;;  %vm253_vm13 = vmor %vm251_vm12, %vm252_vm9 }
  0xab   :  { %v274_v33 = vsel %vm271_vm8, %v273_v25, %v269_v30  ;;  %v248_v35 = vsub.f32 1.0, %v247_v26  ;;  %v276_v36 = vadd.f32 %v244_v31, %v216_v22  ;;  %v290_v48 = vmul.f32 %v344_v28, %v471_v37  ;;  %v346_v54 = vpop.eup %345 }
  0xac   :  { %v278_v40 = vadd.f32 %v274_v33, %v218_v29  ;;  %v289_v59 = vmul.f32 %v346_v54, %v475_v47 }
  0xad   :  { %v249_v43 = vmul.f32 %v340_v19, %v248_v35  ;;  %v279_v45 = vmul.f32 %v276_v36, %v473_v38 }
  0xae   :  { %v281_v46 = vmul.f32 %v278_v40, %v471_v37  ;;  %v217_v37 = vadd.f32 %v214_v34, %v211_v49 }
  0xaf   :  { %v250_v50 = vadd.f32 %v340_v19, %v249_v43  ;;  %v294_v51 = vsel %vm291_vm11, %v288_v42, %v279_v45 }
  0xb0   :  { %v296_v52 = vsel %vm293_vm10, %v290_v48, %v281_v46  ;;  %297 = vst.msk [vmem:[%s526_s10] sm:$0xff] %vm63_vm0, %v294_v51 }
  0xb1   :  { %299 = vst.msk [vmem:[%s526_s10 + $0x10] sm:$0xff] %vm63_vm0, %v296_v52  ;;  %v254_v38 = vsel %vm253_vm13, %v340_v19, %v250_v50 }
  0xb2   :  { %v259_v55 = vsel %vm256_vm14, %v258_v53, %v254_v38 }
  0xb3   :  { %v277_v56 = vadd.f32 %v259_v55, %v217_v37 }
  0xb5   :  { %v280_v58 = vmul.f32 %v277_v56, %v475_v47 }
  0xb7   :  { %v295_v60 = vsel %vm292_vm15, %v289_v59, %v280_v58 }
  0xb8   :  { %298 = vst.msk [vmem:[%s526_s10 + $0x8] sm:$0xff] %vm63_vm0, %v295_v60 }

</bundles_post_ra>
